<compile_context>
chip_gen: v5e
topology: v5e:2x2
jax: 0.10.0
libtpu: 0.0.40
codegen_flags: <defaults>
</compile_context>

<pallas_src>
import functools
import math

import jax
import jax.numpy as jnp
from jax.experimental import pallas as pl
from jax.experimental.pallas import tpu as pltpu


def _has_multiple_tensorcores():
    """True on chips with >1 TensorCore per chip (v7x-class)."""
    try:
        kind = jax.devices()[0].device_kind.lower()
    except Exception:  # pragma: no cover
        return False
    return "v7" in kind


def _choose_block_docs(n_docs, seq_len, hidden, vmem_budget_bytes=6 << 20):
    """VMEM-driven doc packing per grid step.

    Per-doc hot-path footprint ~ 3 live (L*L, H) f32 slabs (pair, P/h, bias
    temporaries) plus a handful of (L, H) terms.  Keep >= 2 grid steps only
    when a second TensorCore can use the parallel axis (v7x); on single-TC
    chips pack as many docs as the budget allows.
    """
    per_doc = (3 * seq_len * seq_len + 8 * seq_len) * hidden * 4
    cap = max(1, vmem_budget_bytes // max(per_doc, 1))
    min_steps = 2 if (_has_multiple_tensorcores() and n_docs >= 2) else 1
    cap = int(min(cap, max(1, n_docs // min_steps), n_docs))
    for b in range(cap, 0, -1):
        if n_docs % b == 0:
            return b
    return 1


def _cond_self_attn_kernel(doc_ref, agg_ref, q_ref, dmr_ref, dmc_ref,
                           w1a_ref, w1b_ref, w1c_ref, b1_ref, w2_ref, b2_ref,
                           out_ref, *, block_docs, seq_len, hidden):
    B, L, H = block_docs, seq_len, hidden
    f32 = jnp.float32
    bf16 = jnp.bfloat16
    inv_sqrt_h = 1.0 / math.sqrt(float(H))

    # Weights: constant block index -> DMA'd once, resident across grid steps.
    w1a = w1a_ref[...]          # (H, H) bf16, acts on doc_self_info (pairwise)
    w1b = w1b_ref[...]          # (H, H) bf16, acts on word_ent_agg (i-indexed)
    w1c = w1c_ref[...]          # (H, H) bf16, acts on word_q_agg  (j-indexed)
    b1 = b1_ref[...]            # (1, H) f32
    w2 = w2_ref[...]            # (1, H) f32
    b2 = b2_ref[...]            # (1, 1) f32

    doc = doc_ref[...]          # (B, L, H) f32
    agg = agg_ref[...]          # (B, 1, H) f32
    q = q_ref[...]              # (B, 1, H) f32
    dmr = dmr_ref[...]          # (B, 1, L) f32
    dmc = dmc_ref[...]          # (B, L, 1) f32

    # --- hoisted i-indexed / j-indexed contributions: one matmul each --------
    A = jnp.dot((doc * agg).reshape(B * L, H).astype(bf16), w1b,
                preferred_element_type=f32).reshape(B, L, H)      # (B, L, H)
    Bjb = (jnp.dot((doc * q).reshape(B * L, H).astype(bf16), w1c,
                   preferred_element_type=f32) + b1).reshape(B, L, H)

    # --- pairwise term: one broadcast + one (B*L*L, H)@(H, H) MXU matmul -----
    pair = (doc[:, :, None, :] * doc[:, None, :, :]).reshape(B * L * L, H)
    P = jnp.dot(pair.astype(bf16), w1a,
                preferred_element_type=f32).reshape(B, L, L, H)   # (B, L, L, H)

    # h[b,i,j,:] = tanh(P + A[b,i] + Bj[b,j] + b1)   (bias added in place of P)
    h = jnp.tanh(P + A[:, :, None, :] + Bjb[:, None, :, :])       # (B, L, L, H)

    # --- score: single lane-axis contraction with w2 (XLU/VPU, no MXU pushes)
    score = (jnp.sum(h * w2, axis=-1) + b2) * inv_sqrt_h          # (B, L, L)

    # --- masked softmax over j (lane axis), whole block at once --------------
    smask = dmc * dmr                                             # (B, L, L)
    score = jnp.where(smask == 0.0, -1e9, score)
    score = score - jnp.max(score, axis=-1, keepdims=True)
    e = jnp.exp(score)
    w = e / jnp.sum(e, axis=-1, keepdims=True)                    # exact divide
    w = w * smask                                                 # (B, L, L)

    # --- attention matmul + one contiguous (B, L, H) slab store --------------
    out = jnp.einsum('bij,bjh->bih', w.astype(bf16), doc.astype(bf16),
                     preferred_element_type=f32)                  # (B, L, H)
    out_ref[...] = out.astype(out_ref.dtype)


def conditional_self_attn_encoder(word_ent_info, word_ent_info_mask, doc, doc_mask,
                                  q_for_text, params, block_docs=None):
    N, L, H = doc.shape
    bsz = q_for_text.shape[0]
    docs_per = N // bsz
    W1a, W1b, W1c, b1, w2, b2 = params

    if block_docs is None:
        block_docs = _choose_block_docs(N, L, H)

    # Glue / layout plumbing in plain XLA.
    # Reduce word_ent_info here so the kernel never DMAs the (L, H) entity block.
    wem = word_ent_info_mask.astype(jnp.float32)
    agg = jnp.einsum('nl,nlh->nh', wem, word_ent_info).reshape(N, 1, H)
    q_e = jnp.repeat(q_for_text, docs_per, axis=0).reshape(N, 1, H)
    dmr = doc_mask.astype(jnp.float32).reshape(N, 1, L)
    dmc = doc_mask.astype(jnp.float32).reshape(N, L, 1)
    # bf16 MXU path: weights cast once (halves weight DMA); accumulation is f32.
    w1a_b = W1a.astype(jnp.bfloat16)
    w1b_b = W1b.astype(jnp.bfloat16)
    w1c_b = W1c.astype(jnp.bfloat16)
    b1_ = b1.reshape(1, H).astype(jnp.float32)
    w2_ = w2.reshape(1, H).astype(jnp.float32)
    b2_ = b2.reshape(1, 1).astype(jnp.float32)

    kernel = functools.partial(_cond_self_attn_kernel,
                               block_docs=block_docs, seq_len=L, hidden=H)
    tiled = lambda n: (n, 0, 0)
    full = lambda n: (0, 0)

    return pl.pallas_call(
        kernel,
        out_shape=jax.ShapeDtypeStruct((N, L, H), jnp.float32),
        grid_spec=pltpu.PrefetchScalarGridSpec(
            num_scalar_prefetch=0,
            grid=(N // block_docs,),
            in_specs=[
                pl.BlockSpec((block_docs, L, H), tiled),   # doc
                pl.BlockSpec((block_docs, 1, H), tiled),   # agg (precomputed)
                pl.BlockSpec((block_docs, 1, H), tiled),   # q per doc
                pl.BlockSpec((block_docs, 1, L), tiled),   # doc mask (row layout)
                pl.BlockSpec((block_docs, L, 1), tiled),   # doc mask (col layout)
                pl.BlockSpec((H, H), full),                # W1a (bf16)
                pl.BlockSpec((H, H), full),                # W1b (bf16)
                pl.BlockSpec((H, H), full),                # W1c (bf16)
                pl.BlockSpec((1, H), full),                # b1
                pl.BlockSpec((1, H), full),                # w2
                pl.BlockSpec((1, 1), full),                # b2
            ],
            out_specs=pl.BlockSpec((block_docs, L, H), tiled),
        ),
        compiler_params=pltpu.CompilerParams(
            dimension_semantics=("parallel",)),
    )(doc, agg, q_e, dmr, dmc, w1a_b, w1b_b, w1c_b, b1_, w2_, b2_)


def _reference(word_ent_info, wem, doc, dmask, q, W1a, W1b, W1c, b1, w2, b2):
    """Pure-JAX replica of the PyTorch forward (for verification, f32)."""
    N, L, H = doc.shape
    bsz = q.shape[0]
    wem = wem.astype(jnp.float32)
    dmask = dmask.astype(jnp.float32)
    agg = jnp.einsum('nl,nlh->nh', wem, word_ent_info)              # (N, H)
    q_e = jnp.repeat(q, N // bsz, axis=0)                            # (N, H)
    word_q = doc * q_e[:, None, :]                                   # j-indexed
    word_ent = doc * agg[:, None, :]                                 # i-indexed
    pair = doc[:, :, None, :] * doc[:, None, :, :]                   # (N, L, L, H)
    feat = jnp.concatenate([
        pair,
        jnp.broadcast_to(word_ent[:, :, None, :], (N, L, L, H)),
        jnp.broadcast_to(word_q[:, None, :, :], (N, L, L, H)),
    ], axis=-1)                                                      # (N, L, L, 3H)
    W1 = jnp.concatenate([W1a, W1b, W1c], axis=0)                    # (3H, H)
    hidden = jnp.tanh(feat @ W1 + b1)
    score = (hidden @ w2 + b2[0]) / math.sqrt(H)                     # (N, L, L)
    smask = dmask[:, :, None] * dmask[:, None, :]
    score = jnp.where(smask == 0.0, -1e9, score)
    w = jax.nn.softmax(score, axis=-1) * smask
    return jnp.einsum('nij,njh->nih', w, doc)


def _init_params(key, hidden):
    k1, k2, k3, k4 = jax.random.split(key, 4)
    bound1 = 1.0 / math.sqrt(3 * hidden)
    W1 = jax.random.uniform(k1, (3 * hidden, hidden), jnp.float32, -bound1, bound1)
    b1 = jax.random.uniform(k2, (hidden,), jnp.float32, -bound1, bound1)
    bound2 = 1.0 / math.sqrt(hidden)
    w2 = jax.random.uniform(k3, (hidden,), jnp.float32, -bound2, bound2)
    b2 = jax.random.uniform(k4, (1,), jnp.float32, -bound2, bound2)
    W1a, W1b, W1c = W1[:hidden], W1[hidden:2 * hidden], W1[2 * hidden:]
    return W1a, W1b, W1c, b1, w2, b2


if __name__ == "__main__":
    bsz, docs_per_batch, L, H = 2, 2, 8, 32
    N = bsz * docs_per_batch

    key = jax.random.PRNGKey(0)
    kp, k_wei, k_wem, k_doc, k_q = jax.random.split(key, 5)
    params = _init_params(kp, H)

    word_ent_info = jax.random.normal(k_wei, (N, L, H), jnp.float32)
    word_ent_info_mask = (jax.random.uniform(k_wem, (N, L)) > 0.5).astype(jnp.float32)
    doc = jax.random.normal(k_doc, (N, L, H), jnp.float32)
    # valid lengths per document
    lengths = jnp.array([8, 6, 7, 5], dtype=jnp.int32)
    doc_mask = (jnp.arange(L)[None, :] < lengths[:, None]).astype(jnp.float32)
    q_for_text = jax.random.normal(k_q, (bsz, H), jnp.float32)

    out = conditional_self_attn_encoder(
        word_ent_info, word_ent_info_mask, doc, doc_mask, q_for_text, params)
    out = jax.block_until_ready(out)

    ref = _reference(word_ent_info, word_ent_info_mask, doc, doc_mask, q_for_text,
                     *params)
    assert out.shape == (N, L, H)
    assert jnp.all(jnp.isfinite(out))
    assert jnp.allclose(out, ref, atol=5e-2, rtol=5e-2), float(
        jnp.max(jnp.abs(out - ref)))

    print("KERNEL_OK")
</pallas_src>

<mosaic_0001>
module attributes {stable_mosaic.version = 11 : i64} {
  func.func @_cond_self_attn_kernel(%arg0: i32, %arg1: memref<4x8x32xf32, #tpu.memory_space<vmem>>, %arg2: memref<4x1x32xf32, #tpu.memory_space<vmem>>, %arg3: memref<4x1x32xf32, #tpu.memory_space<vmem>>, %arg4: memref<4x1x8xf32, #tpu.memory_space<vmem>>, %arg5: memref<4x8x1xf32, #tpu.memory_space<vmem>>, %arg6: memref<32x32xbf16, #tpu.memory_space<vmem>>, %arg7: memref<32x32xbf16, #tpu.memory_space<vmem>>, %arg8: memref<32x32xbf16, #tpu.memory_space<vmem>>, %arg9: memref<1x32xf32, #tpu.memory_space<vmem>>, %arg10: memref<1x32xf32, #tpu.memory_space<vmem>>, %arg11: memref<1x1xf32, #tpu.memory_space<vmem>>, %arg12: memref<4x8x32xf32, #tpu.memory_space<vmem>>) attributes {dimension_semantics = [#tpu.dimension_semantics<parallel>], iteration_bounds = array<i64: 1>, scalar_prefetch = 0 : i64, scratch_operands = 0 : i64, tpu.core_type = #tpu.core_type<tc>, window_params = [{transform_indices = @transform_0, window_bounds = array<i64: 4, 8, 32>}, {transform_indices = @transform_1, window_bounds = array<i64: 4, 1, 32>}, {transform_indices = @transform_2, window_bounds = array<i64: 4, 1, 32>}, {transform_indices = @transform_3, window_bounds = array<i64: 4, 1, 8>}, {transform_indices = @transform_4, window_bounds = array<i64: 4, 8, 1>}, {pipeline_mode = #tpu.pipeline_mode<synchronous>, transform_indices = @transform_5, window_bounds = array<i64: 32, 32>}, {pipeline_mode = #tpu.pipeline_mode<synchronous>, transform_indices = @transform_6, window_bounds = array<i64: 32, 32>}, {pipeline_mode = #tpu.pipeline_mode<synchronous>, transform_indices = @transform_7, window_bounds = array<i64: 32, 32>}, {pipeline_mode = #tpu.pipeline_mode<synchronous>, transform_indices = @transform_8, window_bounds = array<i64: 1, 32>}, {pipeline_mode = #tpu.pipeline_mode<synchronous>, transform_indices = @transform_9, window_bounds = array<i64: 1, 32>}, {pipeline_mode = #tpu.pipeline_mode<synchronous>, transform_indices = @transform_10, window_bounds = array<i64: 1, 1>}, {transform_indices = @transform_11, window_bounds = array<i64: 4, 8, 32>}]} {
    %c0 = arith.constant 0 : index
    %c0_0 = arith.constant 0 : index
    %0 = vector.load %arg6[%c0, %c0_0] : memref<32x32xbf16, #tpu.memory_space<vmem>>, vector<32x32xbf16>
    %c0_1 = arith.constant 0 : index
    %c0_2 = arith.constant 0 : index
    %1 = vector.load %arg7[%c0_1, %c0_2] : memref<32x32xbf16, #tpu.memory_space<vmem>>, vector<32x32xbf16>
    %c0_3 = arith.constant 0 : index
    %c0_4 = arith.constant 0 : index
    %2 = vector.load %arg8[%c0_3, %c0_4] : memref<32x32xbf16, #tpu.memory_space<vmem>>, vector<32x32xbf16>
    %c0_5 = arith.constant 0 : index
    %c0_6 = arith.constant 0 : index
    %3 = vector.load %arg9[%c0_5, %c0_6] : memref<1x32xf32, #tpu.memory_space<vmem>>, vector<1x32xf32>
    %c0_7 = arith.constant 0 : index
    %c0_8 = arith.constant 0 : index
    %4 = vector.load %arg10[%c0_7, %c0_8] : memref<1x32xf32, #tpu.memory_space<vmem>>, vector<1x32xf32>
    %c0_9 = arith.constant 0 : index
    %c0_10 = arith.constant 0 : index
    %5 = vector.load %arg11[%c0_9, %c0_10] : memref<1x1xf32, #tpu.memory_space<vmem>>, vector<1x1xf32>
    %c0_11 = arith.constant 0 : index
    %c0_12 = arith.constant 0 : index
    %c0_13 = arith.constant 0 : index
    %6 = vector.load %arg1[%c0_11, %c0_12, %c0_13] : memref<4x8x32xf32, #tpu.memory_space<vmem>>, vector<4x8x32xf32>
    %c0_14 = arith.constant 0 : index
    %c0_15 = arith.constant 0 : index
    %c0_16 = arith.constant 0 : index
    %7 = vector.load %arg2[%c0_14, %c0_15, %c0_16] : memref<4x1x32xf32, #tpu.memory_space<vmem>>, vector<4x1x32xf32>
    %c0_17 = arith.constant 0 : index
    %c0_18 = arith.constant 0 : index
    %c0_19 = arith.constant 0 : index
    %8 = vector.load %arg3[%c0_17, %c0_18, %c0_19] : memref<4x1x32xf32, #tpu.memory_space<vmem>>, vector<4x1x32xf32>
    %c0_20 = arith.constant 0 : index
    %c0_21 = arith.constant 0 : index
    %c0_22 = arith.constant 0 : index
    %9 = vector.load %arg4[%c0_20, %c0_21, %c0_22] : memref<4x1x8xf32, #tpu.memory_space<vmem>>, vector<4x1x8xf32>
    %c0_23 = arith.constant 0 : index
    %c0_24 = arith.constant 0 : index
    %c0_25 = arith.constant 0 : index
    %10 = vector.load %arg5[%c0_23, %c0_24, %c0_25] : memref<4x8x1xf32, #tpu.memory_space<vmem>>, vector<4x8x1xf32>
    %11 = vector.broadcast %7 : vector<4x1x32xf32> to vector<4x8x32xf32>
    %12 = arith.mulf %6, %11 : vector<4x8x32xf32>
    %13 = vector.shape_cast %12 : vector<4x8x32xf32> to vector<32x32xf32>
    %14 = arith.truncf %13 : vector<32x32xf32> to vector<32x32xbf16>
    %cst = arith.constant dense<0.000000e+00> : vector<32x32xf32>
    %15 = tpu.matmul %14, %1, %cst {dimension_numbers = #tpu.dot_dimension_numbers<[1], [0], [0], [1], [0, 0, 1, 1], [], []>} : vector<32x32xbf16>, vector<32x32xbf16>, vector<32x32xf32> -> vector<32x32xf32>
    %16 = vector.shape_cast %15 : vector<32x32xf32> to vector<4x8x32xf32>
    %17 = vector.broadcast %8 : vector<4x1x32xf32> to vector<4x8x32xf32>
    %18 = arith.mulf %6, %17 : vector<4x8x32xf32>
    %19 = vector.shape_cast %18 : vector<4x8x32xf32> to vector<32x32xf32>
    %20 = arith.truncf %19 : vector<32x32xf32> to vector<32x32xbf16>
    %cst_26 = arith.constant dense<0.000000e+00> : vector<32x32xf32>
    %21 = tpu.matmul %20, %2, %cst_26 {dimension_numbers = #tpu.dot_dimension_numbers<[1], [0], [0], [1], [0, 0, 1, 1], [], []>} : vector<32x32xbf16>, vector<32x32xbf16>, vector<32x32xf32> -> vector<32x32xf32>
    %22 = vector.broadcast %3 : vector<1x32xf32> to vector<32x32xf32>
    %23 = arith.addf %21, %22 : vector<32x32xf32>
    %24 = vector.shape_cast %23 : vector<32x32xf32> to vector<4x8x32xf32>
    %25 = vector.shape_cast %6 : vector<4x8x32xf32> to vector<4x8x1x32xf32>
    %26 = vector.shape_cast %6 : vector<4x8x32xf32> to vector<4x1x8x32xf32>
    %27 = vector.broadcast %25 : vector<4x8x1x32xf32> to vector<4x8x8x32xf32>
    %28 = vector.broadcast %26 : vector<4x1x8x32xf32> to vector<4x8x8x32xf32>
    %29 = arith.mulf %27, %28 : vector<4x8x8x32xf32>
    %30 = vector.shape_cast %29 : vector<4x8x8x32xf32> to vector<256x32xf32>
    %31 = arith.truncf %30 : vector<256x32xf32> to vector<256x32xbf16>
    %cst_27 = arith.constant dense<0.000000e+00> : vector<256x32xf32>
    %32 = tpu.matmul %31, %0, %cst_27 {dimension_numbers = #tpu.dot_dimension_numbers<[1], [0], [0], [1], [0, 0, 1, 1], [], []>} : vector<256x32xbf16>, vector<32x32xbf16>, vector<256x32xf32> -> vector<256x32xf32>
    %33 = vector.shape_cast %32 : vector<256x32xf32> to vector<4x8x8x32xf32>
    %34 = vector.shape_cast %16 : vector<4x8x32xf32> to vector<4x8x1x32xf32>
    %35 = vector.broadcast %34 : vector<4x8x1x32xf32> to vector<4x8x8x32xf32>
    %36 = arith.addf %33, %35 : vector<4x8x8x32xf32>
    %37 = vector.shape_cast %24 : vector<4x8x32xf32> to vector<4x1x8x32xf32>
    %38 = vector.broadcast %37 : vector<4x1x8x32xf32> to vector<4x8x8x32xf32>
    %39 = arith.addf %36, %38 : vector<4x8x8x32xf32>
    %40 = math.tanh %39 : vector<4x8x8x32xf32>
    %41 = vector.shape_cast %4 : vector<1x32xf32> to vector<1x1x1x32xf32>
    %42 = vector.broadcast %41 : vector<1x1x1x32xf32> to vector<4x8x8x32xf32>
    %43 = arith.mulf %40, %42 : vector<4x8x8x32xf32>
    %cst_28 = arith.constant dense<0.000000e+00> : vector<4x8x8xf32>
    %44 = vector.multi_reduction <add>, %43, %cst_28 [3] : vector<4x8x8x32xf32> to vector<4x8x8xf32>
    %45 = vector.shape_cast %5 : vector<1x1xf32> to vector<1x1x1xf32>
    %46 = vector.broadcast %45 : vector<1x1x1xf32> to vector<4x8x8xf32>
    %47 = arith.addf %44, %46 : vector<4x8x8xf32>
    %cst_29 = arith.constant 0.176776692 : f32
    %48 = vector.broadcast %cst_29 : f32 to vector<4x8x8xf32>
    %49 = arith.mulf %47, %48 : vector<4x8x8xf32>
    %50 = vector.broadcast %10 : vector<4x8x1xf32> to vector<4x8x8xf32>
    %51 = vector.broadcast %9 : vector<4x1x8xf32> to vector<4x8x8xf32>
    %52 = arith.mulf %50, %51 : vector<4x8x8xf32>
    %cst_30 = arith.constant 0.000000e+00 : f32
    %53 = vector.broadcast %cst_30 : f32 to vector<4x8x8xf32>
    %54 = arith.cmpf oeq, %52, %53 : vector<4x8x8xf32>
    %cst_31 = arith.constant -1.000000e+09 : f32
    %55 = vector.broadcast %cst_31 : f32 to vector<4x8x8xf32>
    %56 = arith.select %54, %55, %49 : vector<4x8x8xi1>, vector<4x8x8xf32>
    %cst_32 = arith.constant dense<0xFF800000> : vector<4x8xf32>
    %57 = vector.multi_reduction <maximumf>, %56, %cst_32 [2] : vector<4x8x8xf32> to vector<4x8xf32>
    %58 = vector.shape_cast %57 : vector<4x8xf32> to vector<4x8x1xf32>
    %59 = vector.broadcast %58 : vector<4x8x1xf32> to vector<4x8x8xf32>
    %60 = arith.subf %56, %59 : vector<4x8x8xf32>
    %61 = math.exp %60 : vector<4x8x8xf32>
    %cst_33 = arith.constant dense<0.000000e+00> : vector<4x8xf32>
    %62 = vector.multi_reduction <add>, %61, %cst_33 [2] : vector<4x8x8xf32> to vector<4x8xf32>
    %63 = vector.shape_cast %62 : vector<4x8xf32> to vector<4x8x1xf32>
    %64 = vector.broadcast %63 : vector<4x8x1xf32> to vector<4x8x8xf32>
    %65 = arith.divf %61, %64 : vector<4x8x8xf32>
    %66 = arith.mulf %65, %52 : vector<4x8x8xf32>
    %67 = arith.truncf %66 : vector<4x8x8xf32> to vector<4x8x8xbf16>
    %68 = arith.truncf %6 : vector<4x8x32xf32> to vector<4x8x32xbf16>
    "tpu.trace_start"() <{level = 10 : i32, message = "bij,bjh->bih"}> : () -> ()
    %cst_34 = arith.constant dense<0.000000e+00> : vector<4x8x32xf32>
    %69 = tpu.matmul %67, %68, %cst_34 {dimension_numbers = #tpu.dot_dimension_numbers<[2], [1], [1], [2], [0, 0, 0, 1, 1, 2], [0], [0]>} : vector<4x8x8xbf16>, vector<4x8x32xbf16>, vector<4x8x32xf32> -> vector<4x8x32xf32>
    "tpu.trace_stop"() : () -> ()
    %c0_35 = arith.constant 0 : index
    %c0_36 = arith.constant 0 : index
    %c0_37 = arith.constant 0 : index
    %70 = vector.load %arg12[%c0_35, %c0_36, %c0_37] : memref<4x8x32xf32, #tpu.memory_space<vmem>>, vector<4x8x32xf32>
    tpu.vector_store %arg12[%c0_35, %c0_36, %c0_37], %69 {strides = array<i32>} : memref<4x8x32xf32, #tpu.memory_space<vmem>>, vector<4x8x32xf32>,
    return
  }
  func.func @transform_0(%arg0: i32) -> (i32, i32, i32) {
    %c0_i32 = arith.constant 0 : i32
    %c0_i32_0 = arith.constant 0 : i32
    %c0_i32_1 = arith.constant 0 : i32
    return %arg0, %c0_i32, %c0_i32_0 : i32, i32, i32
  }
  func.func @transform_1(%arg0: i32) -> (i32, i32, i32) {
    %c0_i32 = arith.constant 0 : i32
    %c0_i32_0 = arith.constant 0 : i32
    %c0_i32_1 = arith.constant 0 : i32
    return %arg0, %c0_i32, %c0_i32_0 : i32, i32, i32
  }
  func.func @transform_2(%arg0: i32) -> (i32, i32, i32) {
    %c0_i32 = arith.constant 0 : i32
    %c0_i32_0 = arith.constant 0 : i32
    %c0_i32_1 = arith.constant 0 : i32
    return %arg0, %c0_i32, %c0_i32_0 : i32, i32, i32
  }
  func.func @transform_3(%arg0: i32) -> (i32, i32, i32) {
    %c0_i32 = arith.constant 0 : i32
    %c0_i32_0 = arith.constant 0 : i32
    %c0_i32_1 = arith.constant 0 : i32
    return %arg0, %c0_i32, %c0_i32_0 : i32, i32, i32
  }
  func.func @transform_4(%arg0: i32) -> (i32, i32, i32) {
    %c0_i32 = arith.constant 0 : i32
    %c0_i32_0 = arith.constant 0 : i32
    %c0_i32_1 = arith.constant 0 : i32
    return %arg0, %c0_i32, %c0_i32_0 : i32, i32, i32
  }
  func.func @transform_5(%arg0: i32) -> (i32, i32) {
    %c0_i32 = arith.constant 0 : i32
    %c0_i32_0 = arith.constant 0 : i32
    %c0_i32_1 = arith.constant 0 : i32
    return %c0_i32, %c0_i32_0 : i32, i32
  }
  func.func @transform_6(%arg0: i32) -> (i32, i32) {
    %c0_i32 = arith.constant 0 : i32
    %c0_i32_0 = arith.constant 0 : i32
    %c0_i32_1 = arith.constant 0 : i32
    return %c0_i32, %c0_i32_0 : i32, i32
  }
  func.func @transform_7(%arg0: i32) -> (i32, i32) {
    %c0_i32 = arith.constant 0 : i32
    %c0_i32_0 = arith.constant 0 : i32
    %c0_i32_1 = arith.constant 0 : i32
    return %c0_i32, %c0_i32_0 : i32, i32
  }
  func.func @transform_8(%arg0: i32) -> (i32, i32) {
    %c0_i32 = arith.constant 0 : i32
    %c0_i32_0 = arith.constant 0 : i32
    %c0_i32_1 = arith.constant 0 : i32
    return %c0_i32, %c0_i32_0 : i32, i32
  }
  func.func @transform_9(%arg0: i32) -> (i32, i32) {
    %c0_i32 = arith.constant 0 : i32
    %c0_i32_0 = arith.constant 0 : i32
    %c0_i32_1 = arith.constant 0 : i32
    return %c0_i32, %c0_i32_0 : i32, i32
  }
  func.func @transform_10(%arg0: i32) -> (i32, i32) {
    %c0_i32 = arith.constant 0 : i32
    %c0_i32_0 = arith.constant 0 : i32
    %c0_i32_1 = arith.constant 0 : i32
    return %c0_i32, %c0_i32_0 : i32, i32
  }
  func.func @transform_11(%arg0: i32) -> (i32, i32, i32) {
    %c0_i32 = arith.constant 0 : i32
    %c0_i32_0 = arith.constant 0 : i32
    %c0_i32_1 = arith.constant 0 : i32
    return %arg0, %c0_i32, %c0_i32_0 : i32, i32, i32
  }
}

</mosaic_0001>

<bundles_post_ra>
// kernel: tpu_custom_call.1
= control target key start
LH: loop header
LB: loop body
LE: loop exit
PB: predicated region body
PF: predicated region fallthrough
CT: control target
= control target key end

     0   :  { %s2287_s0 = inlined_call_operand.vmem [shape: f32[4,8,32], index: 0, kind: input, shape index: {}]   ;;  %s2288_s1 = inlined_call_operand.vmem [shape: f32[4,1,32], index: 1, kind: input, shape index: {}]   ;;  %s2289_s2 = inlined_call_operand.hbm [shape: f32[4,1,32], index: 2, kind: input, shape index: {}]   ;;  %s2290_s3 = inlined_call_operand.hbm [shape: f32[4,1,8], index: 3, kind: input, shape index: {}]   ;;  %s2291_s4 = inlined_call_operand.vmem [shape: f32[4,8,1], index: 4, kind: input, shape index: {}]   ;;  %s2292_s5 = inlined_call_operand.hbm [shape: bf16[32,32], index: 5, kind: input, shape index: {}]   ;;  %s2293_s6 = inlined_call_operand.hbm [shape: bf16[32,32], index: 6, kind: input, shape index: {}]   ;;  %s2294_s7 = inlined_call_operand.hbm [shape: bf16[32,32], index: 7, kind: input, shape index: {}]   ;;  %s2295_s8 = inlined_call_operand.vmem [shape: f32[1,32], index: 8, kind: input, shape index: {}]   ;;  %s2296_s9 = inlined_call_operand.vmem [shape: f32[1,32], index: 9, kind: input, shape index: {}]   ;;  %s2297_s10 = inlined_call_operand.<no memory space> [shape: f32[1,1], index: 10, kind: input, shape index: {}]   ;;  %s2298_s11 = inlined_call_operand.hbm [shape: f32[4,8,32], index: 11, kind: output, shape index: {}]  }
   0x1   :  { %v16_v0 = vstv %s2297_s10 }
   0x2   :  { %17 = vst [vmem:[#allocation2] sm:$0x1] %v16_v0 }
   0x3   :  { %18 = vsyncpa [#allocation4], 0 }
   0x4   :  { %19 = vsyncpa [#allocation7], 0 }
   0x5   :  { %20 = vsyncpa [#allocation10], 0 }
   0x6   :  { %21 = vsyncpa [#allocation5], 0  ;;  %s43_s21 = sshll.u32 %s2290_s3, 4  ;;  %s1642_s22 = smov [#allocation6]   ;;  %s44_s21 = int_to_ptr.hbm [resolvable:$true] %s43_s21 }
   0x7   :  { %s45_s23 = sshll.u32 %s1642_s22, 4  ;;  %s1643_s24 = smov 16   ;;  %s46_s23 = int_to_ptr.vmem [resolvable:$true] %s45_s23 }
   0x8   :  { %s1644_s25 = smov 1   ;;  %s71_s10 = sshll.u32 %s2293_s6, 4  ;;  %s72_s10 = int_to_ptr.hbm [resolvable:$true] %s71_s10 }
   0x9   :  { %51 = dma.hbm_to_vmem [thread:$0]  %s44_s21, 64, %s46_s23, [#allocation7], %s1643_s24, %s1643_s24, %s1644_s25  }
   0xa   :  { %s1645_s28 = smov [#allocation9]   ;;  %s30_s13 = sshll.u32 %s2289_s2, 4  ;;  %s31_s13 = int_to_ptr.hbm [resolvable:$true] %s30_s13 }
   0xb   :  { %s73_s29 = sshll.u32 %s1645_s28, 4  ;;  %s1646_s3 = smov 64   ;;  %s74_s29 = int_to_ptr.vmem [resolvable:$true] %s73_s29 }
   0xc   :  { %s1647_s14 = smov 4   ;;  %s58_s17 = sshll.u32 %s2292_s5, 4  ;;  %s59_s17 = int_to_ptr.hbm [resolvable:$true] %s58_s17 }
   0xd   :  { %79 = dma.hbm_to_vmem [thread:$0]  %s72_s10, 256, %s74_s29, [#allocation10], %s1646_s3, %s1646_s3, %s1647_s14  }
   0xe   :  { %s1648_s18 = smov [#allocation3]   ;;  %s1649_s6 = smov [#allocation8]  }
   0xf   :  { %s32_s19 = sshll.u32 %s1648_s18, 4  ;;  %s60_s20 = sshll.u32 %s1649_s6, 4  ;;  %s33_s19 = int_to_ptr.vmem [resolvable:$true] %s32_s19  ;;  %s61_s20 = int_to_ptr.vmem [resolvable:$true] %s60_s20 }
  0x10   :  { %38 = dma.hbm_to_vmem [thread:$0]  %s31_s13, 64, %s33_s19, [#allocation4], %s1643_s24, %s1643_s24, %s1644_s25  }
  0x11   :  { %s84_s2 = sshll.u32 %s2294_s7, 4  ;;  %s1650_s23 = smov [#allocation11]   ;;  %s85_s2 = int_to_ptr.hbm [resolvable:$true] %s84_s2 }
  0x12   :  { %66 = dma.hbm_to_vmem [thread:$0]  %s59_s17, 256, %s61_s20, [#allocation7], %s1646_s3, %s1646_s3, %s1647_s14  }
  0x13   :  { %s86_s26 = sshll.u32 %s1650_s23, 4  ;;  %s87_s26 = int_to_ptr.vmem [resolvable:$true] %s86_s26 }
  0x14   :  { %92 = dma.hbm_to_vmem [thread:$0]  %s85_s2, 256, %s87_s26, [#allocation10], %s1646_s3, %s1646_s3, %s1647_s14  }
  0x15   :  { %1634 = dma.done.wait [#allocation4], 64  }
  0x16   :  { %1635 = vsyncadd [#allocation4], 4294967232 }
  0x17   :  { %1636 = dma.done.wait [#allocation7], 320  }
  0x18   :  { %1637 = vsyncadd [#allocation7], 4294966976 }
  0x19   :  { %1638 = dma.done.wait [#allocation10], 512  }
  0x1a   :  { %1639 = vsyncadd [#allocation10], 4294966784  ;;  %v1366_v1 = vld [vmem:[#allocation9 + $0x8] sm:$0xff]  ;;  %v1368_v2 = vld [vmem:[#allocation11 + $0x8] sm:$0xff]  ;;  %vm185_vm0 = vcmask 261120   ;;  %vm1061_vm1 = vcmask 1041409  }
  0x1b   :  { %v1364_v3 = vld [vmem:[#allocation8 + $0x8] sm:$0xff]  ;;  %v1365_v4 = vld [vmem:[#allocation9] sm:$0xff]  ;;  %v1367_v5 = vld [vmem:[#allocation11] sm:$0xff]  ;;  %198 = vmatpush.bf16.msra.mxu0 %v1366_v1  ;;  %256 = vmatpush.bf16.msra.mxu1 %v1368_v2  ;;  %vm1063_vm2 = vcmask 1042434   ;;  %vm1065_vm3 = vcmask 1043459   ;;  %vm1067_vm4 = vcmask 1044484  }
  0x1c   :  { %v1363_v6 = vld [vmem:[#allocation8] sm:$0xff]  ;;  %v1736_v7 = vld [vmem:[%s2287_s0] sm:$0xff]  ;;  %1370 = vmatpush.bf16.msra.mxu2 %v1364_v3  ;;  %1371 = vmatpush.bf16.msra.mxu3 %v1364_v3  ;;  %v1756_v17 = vld [vmem:[%s2287_s0 + $0x18] sm:$0xff]  ;;  %vm1069_vm5 = vcmask 1045509   ;;  %vm1071_vm6 = vcmask 1046534   ;;  %vm1073_vm7 = vcmask 1047559  }
  0x1d   :  { %v1741_v8 = vld [vmem:[%s2287_s0 + $0x8] sm:$0xff]  ;;  %v1391_v9 = vld [vmem:[%s2288_s1] ss:$0 sm:$0xff]  ;;  %v1392_v10 = vld [vmem:[%s2288_s1 + $0x1] ss:$0 sm:$0xff]  ;;  %v295_v19 = vrot.slane %v1756_v17, 2 }
  0x1e   :  { %v1393_v11 = vld [vmem:[#allocation3] ss:$0 sm:$0xff]  ;;  %v167_v12 = vmul.f32 %v1391_v9, %v1736_v7  ;;  %v168_v13 = vmul.f32 %v1392_v10, %v1741_v8  ;;  %v1394_v14 = vld [vmem:[#allocation3 + $0x1] ss:$0 sm:$0xff]  ;;  %v285_v15 = vrot.slane %v1741_v8, 6  ;;  %v286_v16 = vrot.slane %v1741_v8, 7 }
  0x1f   :  { %199 = vmatpush.bf16.msra.mxu0 %v1365_v4  ;;  %257 = vmatpush.bf16.msra.mxu1 %v1367_v5  ;;  %v223_v18 = vmul.f32 %v1393_v11, %v1736_v7  ;;  %v296_v20 = vrot.slane %v1756_v17, 3  ;;  %v224_v22 = vmul.f32 %v1394_v14, %v1741_v8  ;;  %v327_v25 = vperm.slane %v295_v19, 0  ;;  %v1770_v32 = vld [vmem:[%s2287_s0 + $0x10] sm:$0xff]  ;;  %v1395_v35 = vld [vmem:[%s2288_s1 + $0x2] ss:$0 sm:$0xff]  ;;  %s1300_s13 = sshll.u32 %s2298_s11, 4  ;;  %s1301_s13 = int_to_ptr.hbm [resolvable:$true] %s1300_s13 }
  0x20   :  { %1373 = vmatpush.bf16.msra.mxu2 %v1363_v6  ;;  %1374 = vmatpush.bf16.msra.mxu3 %v1363_v6  ;;  %v171_v21 = vpack.c.bf16 %v168_v13, %v167_v12  ;;  %v315_v23 = vperm.slane %v285_v15, 0  ;;  %v316_v24 = vperm.slane %v286_v16, 0  ;;  %v1396_v36 = vld [vmem:[%s2288_s1 + $0x3] ss:$0 sm:$0xff]  ;;  %v287_v37 = vrot.slane %v1770_v32, 1  ;;  %s1653_s3 = smov 128  }
  0x21   :  { %v328_v26 = vperm.slane %v296_v20, 0  ;;  %v227_v27 = vpack.c.bf16 %v224_v22, %v223_v18  ;;  %v391_v30 = vmul.f32 %v327_v25, %v1756_v17  ;;  %v297_v38 = vrot.slane %v1756_v17, 4  ;;  %v1397_v40 = vld [vmem:[#allocation3 + $0x2] ss:$0 sm:$0xff]  ;;  %v1398_v41 = vld [vmem:[#allocation3 + $0x3] ss:$0 sm:$0xff] }
  0x22   :  { %1323 = vmatmul.msk.bf16.vlgmr.msra.gmra.mxu0 %vm185_vm0, %v171_v21  ;;  %v379_v28 = vmul.f32 %v315_v23, %v1741_v8  ;;  %v380_v29 = vmul.f32 %v316_v24, %v1741_v8  ;;  %v298_v39 = vrot.slane %v1756_v17, 5  ;;  %v169_v42 = vmul.f32 %v1395_v35, %v1770_v32  ;;  %s1654_s14 = smov 8  }
  0x23   :  { %479 = vmatpush.bf16.msrb.mxu0 %v1364_v3  ;;  %1369 = vmatpush.bf16.msrb.mxu1 %v1364_v3  ;;  %v392_v31 = vmul.f32 %v328_v26, %v1756_v17  ;;  %v170_v43 = vmul.f32 %v1396_v36, %v1756_v17  ;;  %v317_v44 = vperm.slane %v1770_v32, 0  ;;  %v318_v45 = vperm.slane %v287_v37, 0 }
  0x24   :  { %1333 = vmatmul.msk.bf16.vlgmr.msra.gmra.mxu1 %vm185_vm0, %v227_v27  ;;  %v404_v33 = vpack.c.bf16 %v380_v29, %v379_v28  ;;  %v329_v46 = vperm.slane %v297_v38, 0  ;;  %v330_v47 = vperm.slane %v298_v39, 0  ;;  %v225_v48 = vmul.f32 %v1397_v40, %v1770_v32 }
  0x25   :  { %v410_v34 = vpack.c.bf16 %v392_v31, %v391_v30  ;;  %v226_v49 = vmul.f32 %v1398_v41, %v1756_v17  ;;  %v172_v50 = vpack.c.bf16 %v170_v43, %v169_v42  ;;  %v381_v51 = vmul.f32 %v317_v44, %v1770_v32 }
  0x26   :  { %1350 = vmatmul.msk.bf16.vlgmr.msra.gmra.mxu2 %vm185_vm0, %v404_v33  ;;  %v382_v52 = vmul.f32 %v318_v45, %v1770_v32  ;;  %v393_v53 = vmul.f32 %v329_v46, %v1756_v17  ;;  %v394_v54 = vmul.f32 %v330_v47, %v1756_v17  ;;  %v273_v57 = vrot.slane %v1736_v7, 1 }
  0x27   :  { %480 = vmatpush.bf16.msrb.mxu0 %v1363_v6  ;;  %1372 = vmatpush.bf16.msrb.mxu1 %v1363_v6  ;;  %v228_v55 = vpack.c.bf16 %v226_v49, %v225_v48  ;;  %v278_v59 = vrot.slane %v1736_v7, 6  ;;  %v279_v60 = vrot.slane %v1736_v7, 7  ;;  %v301_v61 = vperm.slane %v1736_v7, 0 }
  0x28   :  { %1356 = vmatmul.msk.bf16.vlgmr.msra.gmra.mxu3 %vm185_vm0, %v410_v34  ;;  %v405_v56 = vpack.c.bf16 %v382_v52, %v381_v51  ;;  %v411_v58 = vpack.c.bf16 %v394_v54, %v393_v53  ;;  %v302_v62 = vperm.slane %v273_v57, 0  ;;  %v288_v63 = vrot.slane %v1770_v32, 2 }
  0x29   :  { %v289_v0 = vrot.slane %v1770_v32, 3  ;;  %v299_v1 = vrot.slane %v1756_v17, 6  ;;  %v300_v2 = vrot.slane %v1756_v17, 7  ;;  %v307_v3 = vperm.slane %v278_v59, 0 }
  0x2a   :  { %v308_v4 = vperm.slane %v279_v60, 0  ;;  %v365_v5 = vmul.f32 %v301_v61, %v1736_v7  ;;  %v366_v6 = vmul.f32 %v302_v62, %v1736_v7  ;;  %v319_v9 = vperm.slane %v288_v63, 0 }
  0x2b   :  { %v320_v10 = vperm.slane %v289_v0, 0  ;;  %v331_v11 = vperm.slane %v299_v1, 0  ;;  %v332_v12 = vperm.slane %v300_v2, 0  ;;  %v371_v13 = vmul.f32 %v307_v3, %v1736_v7 }
  0x2c   :  { %v372_v14 = vmul.f32 %v308_v4, %v1736_v7  ;;  %v397_v15 = vpack.c.bf16 %v366_v6, %v365_v5  ;;  %v383_v16 = vmul.f32 %v319_v9, %v1770_v32  ;;  %v274_v23 = vrot.slane %v1736_v7, 2 }
  0x2d   :  { %v384_v18 = vmul.f32 %v320_v10, %v1770_v32  ;;  %v395_v19 = vmul.f32 %v331_v11, %v1756_v17  ;;  %v396_v20 = vmul.f32 %v332_v12, %v1756_v17  ;;  %v275_v24 = vrot.slane %v1736_v7, 3 }
  0x2e   :  { %v400_v21 = vpack.c.bf16 %v372_v14, %v371_v13  ;;  %v280_v26 = vrot.slane %v1741_v8, 1  ;;  %v303_v27 = vperm.slane %v274_v23, 0  ;;  %v290_v29 = vrot.slane %v1770_v32, 4 }
  0x2f   :  { %v406_v22 = vpack.c.bf16 %v384_v18, %v383_v16  ;;  %v412_v25 = vpack.c.bf16 %v396_v20, %v395_v19  ;;  %v304_v28 = vperm.slane %v275_v24, 0  ;;  %v291_v30 = vrot.slane %v1770_v32, 5  ;;  %v1867_v20 = vld [vmem:[%s2295_s8] ss:$0 sm:$0xff] }
  0x30   :  { %v309_v31 = vperm.slane %v1741_v8, 0  ;;  %v310_v33 = vperm.slane %v280_v26, 0  ;;  %v367_v34 = vmul.f32 %v303_v27, %v1736_v7  ;;  %v321_v36 = vperm.slane %v290_v29, 0 }
  0x31   :  { %v368_v35 = vmul.f32 %v304_v28, %v1736_v7  ;;  %v322_v37 = vperm.slane %v291_v30, 0  ;;  %v276_v45 = vrot.slane %v1736_v7, 4  ;;  %v277_v46 = vrot.slane %v1736_v7, 5 }
  0x32   :  { %1324 = vmatmul.msk.bf16.gmra.mxu0 %vm185_vm0, %v172_v50  ;;  %v373_v38 = vmul.f32 %v309_v31, %v1741_v8  ;;  %v374_v39 = vmul.f32 %v310_v33, %v1741_v8  ;;  %v385_v41 = vmul.f32 %v321_v36, %v1770_v32  ;;  %v281_v47 = vrot.slane %v1741_v8, 2 }
  0x33   :  { %v398_v40 = vpack.c.bf16 %v368_v35, %v367_v34  ;;  %v386_v42 = vmul.f32 %v322_v37, %v1770_v32  ;;  %v282_v48 = vrot.slane %v1741_v8, 3  ;;  %v305_v49 = vperm.slane %v276_v45, 0  ;;  %v1886_v37 = vld [vmem:[%s2296_s9] ss:$0 sm:$0xff] }
  0x34   :  { %1334 = vmatmul.msk.bf16.gmra.mxu1 %vm185_vm0, %v228_v55  ;;  %v401_v43 = vpack.c.bf16 %v374_v39, %v373_v38  ;;  %v306_v50 = vperm.slane %v277_v46, 0  ;;  %v292_v51 = vrot.slane %v1770_v32, 6  ;;  %v293_v52 = vrot.slane %v1770_v32, 7 }
  0x35   :  { %v407_v44 = vpack.c.bf16 %v386_v42, %v385_v41  ;;  %v311_v53 = vperm.slane %v281_v47, 0  ;;  %v312_v54 = vperm.slane %v282_v48, 0  ;;  %v369_v55 = vmul.f32 %v305_v49, %v1736_v7 }
  0x36   :  { %1351 = vmatmul.msk.bf16.gmra.mxu2 %vm185_vm0, %v405_v56  ;;  %v370_v56 = vmul.f32 %v306_v50, %v1736_v7  ;;  %v323_v57 = vperm.slane %v292_v51, 0  ;;  %v283_v2 = vrot.slane %v1741_v8, 4  ;;  %v284_v7 = vrot.slane %v1741_v8, 5 }
  0x37   :  { %v375_v59 = vmul.f32 %v311_v53, %v1741_v8  ;;  %v376_v60 = vmul.f32 %v312_v54, %v1741_v8  ;;  %v294_v3 = vrot.slane %v1756_v17, 1  ;;  %v325_v6 = vperm.slane %v1756_v17, 0 }
  0x38   :  { %1357 = vmatmul.msk.bf16.gmra.mxu3 %vm185_vm0, %v411_v58  ;;  %v324_v58 = vperm.slane %v293_v52, 0  ;;  %v399_v61 = vpack.c.bf16 %v370_v56, %v369_v55  ;;  %v387_v62 = vmul.f32 %v323_v57, %v1770_v32  ;;  %v313_v4 = vperm.slane %v283_v2, 0 }
  0x39   :  { %v402_v0 = vpack.c.bf16 %v376_v60, %v375_v59  ;;  %v314_v5 = vperm.slane %v284_v7, 0  ;;  %v326_v9 = vperm.slane %v294_v3, 0  ;;  %v389_v11 = vmul.f32 %v325_v6, %v1756_v17 }
  0x3a   :  { %v388_v63 = vmul.f32 %v324_v58, %v1770_v32  ;;  %v377_v32 = vmul.f32 %v313_v4, %v1741_v8  ;;  %v1651_v16 = vmov 0   ;;  %vm1104_vm9 = vcmask 64512  }
  0x3b   :  { %v378_v10 = vmul.f32 %v314_v5, %v1741_v8  ;;  %v390_v12 = vmul.f32 %v326_v9, %v1756_v17  ;;  %1389 = vset.pattern.permute.xlu2 %v1651_v16  ;;  %1388 = vset.pattern.permute.xlu1 %v1651_v16  ;;  %v1400_v8 = vld [vmem:[#allocation2] ss:$0 sm:$0xff]  ;;  %vm1216_vm13 = vcmask 1043456  }
  0x3c   :  { %v408_v1 = vpack.c.bf16 %v388_v63, %v387_v62  ;;  %1390 = vset.pattern.permute.xlu0 %v1651_v16  ;;  %888 = vperm.xlu1 %1388, %v1400_v8  }
  0x3d   :  { %v403_v13 = vpack.c.bf16 %v378_v10, %v377_v32  ;;  %v409_v14 = vpack.c.bf16 %v390_v12, %v389_v11 }
  0x42   :  { %1343 = vmatmul.msk.bf16.vlgmr.msrb.gmra.mxu0 %vm185_vm0, %v397_v15  ;;  %v151_v15 = vld [vmem:[%s2291_s4] sm:$0xff] }
  0x43   :  { %957 = vperm.xlu2 %1389, %v151_v15  }
  0x44   :  { %1346 = vmatmul.msk.bf16.vlgmr.msrb.gmra.mxu1 %vm185_vm0, %v400_v21 }
  0x46   :  { %1352 = vmatmul.msk.bf16.gmra.mxu2 %vm185_vm0, %v406_v22 }
  0x48   :  { %1358 = vmatmul.msk.bf16.gmra.mxu3 %vm185_vm0, %v412_v25 }
  0x52   :  { %1344 = vmatmul.msk.bf16.gmra.mxu0 %vm185_vm0, %v398_v40 }
  0x54   :  { %1347 = vmatmul.msk.bf16.gmra.mxu1 %vm185_vm0, %v401_v43 }
  0x56   :  { %1353 = vmatmul.msk.bf16.gmra.mxu2 %vm185_vm0, %v407_v44 }
  0x62   :  { %1345 = vmatmul.msk.bf16.gmra.mxu0 %vm185_vm0, %v399_v61 }
  0x64   :  { %1348 = vmatmul.msk.bf16.gmra.mxu1 %vm185_vm0, %v402_v0 }
  0x66   :  { %1354 = vmatmul.msk.bf16.gmra.mxu2 %vm185_vm0, %v408_v1 }
  0x74   :  { %1349 = vmatmul.msk.bf16.gmra.mxu1 %vm185_vm0, %v403_v13 }
  0x76   :  { %1355 = vmatmul.msk.bf16.gmra.mxu2 %vm185_vm0, %v409_v14 }
  0x9f   :  { %v1860_v18 = vpop.f32.mrf.mxu0 }
  0xa0   :  { %v571_v47 = vrot.slane %v1860_v18, 6  ;;  %v594_v50 = vperm.slane %v1860_v18, 0  ;;  %v566_v0 = vrot.slane %v1860_v18, 1  ;;  %v572_v7 = vrot.slane %v1860_v18, 7 }
  0xa1   :  { %v259_v17 = vpop.f32.mrf.mxu1  ;;  %v567_v16 = vrot.slane %v1860_v18, 2 }
  0xa2   :  { %v1900_v53 = vadd.f32 %v1867_v20, %v259_v17  ;;  %v600_v55 = vperm.slane %v571_v47, 0  ;;  %v595_v4 = vperm.slane %v566_v0, 0  ;;  %v601_v9 = vperm.slane %v572_v7, 0 }
  0xa7   :  { %v1862_v19 = vpop.f32.mrf.mxu0 }
  0xa8   :  { %v578_v21 = vrot.slane %v1862_v19, 6  ;;  %v579_v27 = vrot.slane %v1862_v19, 7 }
  0xa9   :  { %v517_v22 = vpop.f32.mrf.mxu2  ;;  %v261_v23 = vpop.f32.mrf.mxu1 }
  0xaa   :  { %v608_v25 = vperm.slane %v578_v21, 0  ;;  %v1873_v26 = vadd.f32 %v1867_v20, %v261_v23  ;;  %v609_v31 = vperm.slane %v579_v27, 0 }
  0xab   :  { %v1870_v24 = vpop.f32.mrf.mxu3 }
  0xac   :  { %v672_v28 = vadd.f32 %v608_v25, %v517_v22 }
  0xae   :  { %v704_v29 = vadd.f32 %v672_v28, %v1873_v26  ;;  %v596_v28 = vperm.slane %v567_v16, 0 }
  0xaf   :  { %v1877_v30 = vpop.f32.mrf.mxu0 }
  0xb0   :  { %1406 = vtanh.f32 %v704_v29 }
  0xb1   :  { %v519_v33 = vpop.f32.mrf.mxu2  ;;  %v1879_v34 = vpop.f32.mrf.mxu1 }
  0xb2   :  { %v673_v35 = vadd.f32 %v609_v31, %v519_v33 }
  0xb3   :  { %v1881_v36 = vpop.f32.mrf.mxu3 }
  0xb4   :  { %v705_v38 = vadd.f32 %v673_v35, %v1873_v26  ;;  %v602_v35 = vperm.slane %v1862_v19, 0 }
  0xb6   :  { %v1407_v39 = vpop.eup %1406  ;;  %1408 = vtanh.f32 %v705_v38 }
  0xb7   :  { %v1889_v40 = vpop.f32.mrf.mxu0  ;;  %v771_v41 = vmul.f32 %v1407_v39, %v1886_v37 }
  0xb8   :  { %v590_v48 = vrot.slane %v1889_v40, 4  ;;  %v592_v3 = vrot.slane %v1889_v40, 6  ;;  %v593_v23 = vrot.slane %v1889_v40, 7 }
  0xb9   :  { %v1892_v42 = vpop.f32.mrf.mxu2  ;;  %v266_v43 = vpop.f32.mrf.mxu1  ;;  %v831_v44 = vsel %vm185_vm0, %v771_v41, 0.0 }
  0xba   :  { %832 = vadd.xlane.f32.xlu0 %v831_v44  ;;  %v622_v51 = vperm.slane %v590_v48, 0  ;;  %v1903_v57 = vadd.f32 %v1867_v20, %v266_v43  ;;  %v624_v10 = vperm.slane %v592_v3, 0  ;;  %v625_v39 = vperm.slane %v593_v23, 0 }
  0xbb   :  { %v552_v45 = vpop.f32.mrf.mxu3 }
  0xbc   :  { %v1409_v46 = vpop.eup %1408  ;;  %v686_v56 = vadd.f32 %v622_v51, %v552_v45  ;;  %v581_v45 = vrot.slane %v1877_v30, 2 }
  0xbd   :  { %v772_v49 = vmul.f32 %v1409_v46, %v1886_v37 }
  0xbe   :  { %v1913_v1 = vadd.f32 %v686_v56, %v1903_v57  ;;  %v612_v0 = vperm.slane %v581_v45, 0 }
  0xbf   :  { %v482_v52 = vpop.f32.mrf.mxu0  ;;  %v834_v60 = vsel %vm185_vm0, %v772_v49, 0.0  ;;  %v568_v49 = vrot.slane %v1860_v18, 3 }
  0xc0   :  { %v658_v54 = vadd.f32 %v594_v50, %v482_v52  ;;  %v610_v52 = vperm.slane %v1877_v30, 0 }
  0xc1   :  { %v1905_v58 = vpop.f32.mrf.mxu2  ;;  %v497_v59 = vpop.f32.mrf.mxu1 }
  0xc2   :  { %v690_v62 = vadd.f32 %v658_v54, %v1900_v53  ;;  %v664_v63 = vadd.f32 %v600_v55, %v497_v59  ;;  %835 = vadd.xlane.f32.xlu0 %v834_v60  ;;  %v573_v55 = vrot.slane %v1862_v19, 1 }
  0xc3   :  { %v1908_v61 = vpop.f32.mrf.mxu3 }
  0xc4   :  { %1410 = vtanh.f32 %v690_v62  ;;  %v696_v2 = vadd.f32 %v664_v63, %v1900_v53  ;;  %v1945_v62 = vadd.f32 %v1867_v20, %v1879_v34  ;;  %v674_v63 = vadd.f32 %v610_v52, %v1892_v42 }
  0xc5   :  { %v583_v42 = vrot.slane %v1877_v30, 4 }
  0xc6   :  { %1412 = vtanh.f32 %v696_v2  ;;  %v597_v2 = vperm.slane %v568_v49, 0  ;;  %v706_v34 = vadd.f32 %v674_v63, %v1945_v62 }
  0xc7   :  { %v484_v5 = vpop.f32.mrf.mxu0 }
  0xc8   :  { %v659_v6 = vadd.f32 %v595_v4, %v484_v5  ;;  %v603_v5 = vperm.slane %v573_v55, 0 }
  0xc9   :  { %v527_v32 = vpop.f32.mrf.mxu2  ;;  %v499_v11 = vpop.f32.mrf.mxu1 }
  0xca   :  { %v1411_v12 = vpop.eup %1410  ;;  %v691_v14 = vadd.f32 %v659_v6, %v1900_v53  ;;  %v665_v15 = vadd.f32 %v601_v9, %v499_v11  ;;  %v676_v3 = vadd.f32 %v612_v0, %v527_v32  ;;  %v580_v6 = vrot.slane %v1877_v30, 1 }
  0xcb   :  { %v557_v13 = vpop.f32.mrf.mxu3  ;;  %v757_v17 = vmul.f32 %v1411_v12, %v1886_v37  ;;  %v569_v12 = vrot.slane %v1860_v18, 4 }
  0xcc   :  { %v688_v8 = vadd.f32 %v624_v10, %v557_v13  ;;  %1414 = vtanh.f32 %v691_v14  ;;  %v697_v21 = vadd.f32 %v665_v15, %v1900_v53  ;;  %v1413_v27 = vpop.eup %1412  ;;  %v708_v15 = vadd.f32 %v676_v3, %v1945_v62 }
  0xcd   :  { %v789_v25 = vsel %vm185_vm0, %v757_v17, 0.0  ;;  %v763_v29 = vmul.f32 %v1413_v27, %v1886_v37  ;;  %v598_v27 = vperm.slane %v569_v12, 0 }
  0xce   :  { %v1923_v22 = vadd.f32 %v688_v8, %v1903_v57  ;;  %790 = vadd.xlane.f32.xlu0 %v789_v25  ;;  %1416 = vtanh.f32 %v697_v21  ;;  %v611_v8 = vperm.slane %v580_v6, 0  ;;  %v614_v25 = vperm.slane %v583_v42, 0 }
  0xcf   :  { %v487_v31 = vpop.f32.mrf.mxu0  ;;  %v807_v41 = vsel %vm185_vm0, %v763_v29, 0.0 }
  0xd0   :  { %v660_v33 = vadd.f32 %v596_v28, %v487_v31  ;;  %808 = vadd.xlane.f32.xlu2 %v807_v41  ;;  %v675_v28 = vadd.f32 %v611_v8, %v1905_v58  ;;  %v589_v31 = vrot.slane %v1889_v40, 3 }
  0xd1   :  { %v1929_v38 = vpop.f32.mrf.mxu2  ;;  %v502_v43 = vpop.f32.mrf.mxu1 }
  0xd2   :  { %v1415_v44 = vpop.eup %1414  ;;  %v692_v47 = vadd.f32 %v660_v33, %v1900_v53  ;;  %v666_v48 = vadd.f32 %v602_v35, %v502_v43  ;;  %v707_v58 = vadd.f32 %v675_v28, %v1945_v62 }
  0xd3   :  { %v559_v46 = vpop.f32.mrf.mxu3  ;;  %v758_v51 = vmul.f32 %v1415_v44, %v1886_v37  ;;  %v582_v44 = vrot.slane %v1877_v30, 3 }
  0xd4   :  { %v689_v50 = vadd.f32 %v625_v39, %v559_v46  ;;  %1418 = vtanh.f32 %v692_v47  ;;  %v698_v54 = vadd.f32 %v666_v48, %v1873_v26  ;;  %v1417_v60 = vpop.eup %1416  ;;  %v570_v46 = vrot.slane %v1860_v18, 5 }
  0xd5   :  { %v792_v59 = vsel %vm185_vm0, %v758_v51, 0.0  ;;  %v764_v11 = vmul.f32 %v1417_v60, %v1886_v37  ;;  %v621_v48 = vperm.slane %v589_v31, 0 }
  0xd6   :  { %v1940_v56 = vadd.f32 %v689_v50, %v1903_v57  ;;  %793 = vadd.xlane.f32.xlu0 %v792_v59  ;;  %1420 = vtanh.f32 %v698_v54  ;;  %v613_v59 = vperm.slane %v582_v44, 0  ;;  %v599_v18 = vperm.slane %v570_v46, 0 }
  0xd7   :  { %v489_v7 = vpop.f32.mrf.mxu0  ;;  %v810_v17 = vsel %vm185_vm0, %v764_v11, 0.0  ;;  %v685_v0 = vadd.f32 %v621_v48, %v1881_v36  ;;  %v587_v46 = vrot.slane %v1889_v40, 1 }
  0xd8   :  { %v661_v4 = vadd.f32 %v597_v2, %v489_v7  ;;  %v588_v2 = vrot.slane %v1889_v40, 2  ;;  %v677_v7 = vadd.f32 %v613_v59, %v1929_v38 }
  0xd9   :  { %v532_v9 = vpop.f32.mrf.mxu2  ;;  %v504_v10 = vpop.f32.mrf.mxu1  ;;  %v717_v36 = vadd.f32 %v685_v0, %v1903_v57 }
  0xda   :  { %v1419_v20 = vpop.eup %1418  ;;  %v693_v13 = vadd.f32 %v661_v4, %v1900_v53  ;;  %v667_v14 = vadd.f32 %v603_v5, %v504_v10  ;;  %v678_v33 = vadd.f32 %v614_v25, %v532_v9  ;;  %v591_v10 = vrot.slane %v1889_v40, 5 }
  0xdb   :  { %v759_v32 = vmul.f32 %v1419_v20, %v1886_v37  ;;  %v620_v12 = vperm.slane %v588_v2, 0  ;;  %v709_v38 = vadd.f32 %v677_v7, %v1945_v62 }
  0xdc   :  { %1422 = vtanh.f32 %v693_v13  ;;  %v699_v16 = vadd.f32 %v667_v14, %v1873_v26  ;;  %v1421_v23 = vpop.eup %1420  ;;  %v710_v50 = vadd.f32 %v678_v33, %v1945_v62  ;;  %v623_v14 = vperm.slane %v591_v10, 0 }
  0xdd   :  { %v795_v21 = vsel %vm185_vm0, %v759_v32, 0.0  ;;  %1424 = vtanh.f32 %v706_v34  ;;  %v765_v41 = vmul.f32 %v1421_v23, %v1886_v37  ;;  %v684_v32 = vadd.f32 %v620_v12, %v1870_v24 }
  0xde   :  { %811 = vadd.xlane.f32.xlu0 %v810_v17  ;;  %796 = vadd.xlane.f32.xlu1 %v795_v21  ;;  %1426 = vtanh.f32 %v699_v16  ;;  %v618_v24 = vperm.slane %v1889_v40, 0  ;;  %v574_v40 = vrot.slane %v1862_v19, 2  ;;  %v585_v12 = vrot.slane %v1877_v30, 6 }
  0xdf   :  { %v492_v29 = vpop.f32.mrf.mxu0  ;;  %1428 = vtanh.f32 %v708_v15  ;;  %v813_v52 = vsel %vm185_vm0, %v765_v41, 0.0  ;;  %v716_v21 = vadd.f32 %v684_v32, %v1903_v57 }
  0xe0   :  { %v662_v35 = vadd.f32 %v598_v27, %v492_v29  ;;  %1430 = vtanh.f32 %v707_v58  ;;  %v604_v7 = vperm.slane %v574_v40, 0 }
  0xe1   :  { %v1961_v39 = vpop.f32.mrf.mxu2  ;;  %1432 = vtanh.f32 %v710_v50  ;;  %v507_v15 = vpop.f32.mrf.mxu1 }
  0xe2   :  { %v1423_v43 = vpop.eup %1422  ;;  %v1966_v45 = vadd.f32 %v662_v35, %v1900_v53  ;;  %1434 = vtanh.f32 %v717_v36  ;;  %v586_v35 = vrot.slane %v1877_v30, 7  ;;  %v668_v10 = vadd.f32 %v604_v7, %v507_v15 }
  0xe3   :  { %v760_v47 = vmul.f32 %v1423_v43, %v1886_v37  ;;  %v1425_v49 = vpop.eup %1424  ;;  %1436 = vtanh.f32 %v709_v38  ;;  %v584_v15 = vrot.slane %v1877_v30, 5 }
  0xe4   :  { %v1427_v51 = vpop.eup %1426  ;;  %v773_v6 = vmul.f32 %v1425_v49, %v1886_v37  ;;  %1438 = vtanh.f32 %v716_v21  ;;  %v617_v50 = vperm.slane %v586_v35, 0 }
  0xe5   :  { %v798_v54 = vsel %vm185_vm0, %v760_v47, 0.0  ;;  %v1429_v55 = vpop.eup %1428  ;;  %v766_v60 = vmul.f32 %v1427_v51, %v1886_v37  ;;  %v152_v51 = vld [vmem:[%s2291_s4 + $0x8] sm:$0xff]  ;;  %v615_v21 = vperm.slane %v584_v15, 0 }
  0xe6   :  { %814 = vadd.xlane.f32.xlu0 %v813_v52  ;;  %799 = vadd.xlane.f32.xlu2 %v798_v54  ;;  %v775_v9 = vmul.f32 %v1429_v55, %v1886_v37  ;;  %v1431_v20 = vpop.eup %1430  ;;  %v837_v34 = vsel %vm185_vm0, %v773_v6, 0.0  ;;  %v619_v54 = vperm.slane %v587_v46, 0 }
  0xe7   :  { %v494_v63 = vpop.f32.mrf.mxu0  ;;  %v816_v3 = vsel %vm185_vm0, %v766_v60, 0.0  ;;  %v1433_v13 = vpop.eup %1432  ;;  %v774_v8 = vmul.f32 %v1431_v20, %v1886_v37  ;;  %v700_v20 = vadd.f32 %v668_v10, %v1873_v26 }
  0xe8   :  { %v663_v4 = vadd.f32 %v599_v18, %v494_v63  ;;  %817 = vadd.xlane.f32.xlu1 %v816_v3  ;;  %v843_v42 = vsel %vm185_vm0, %v775_v9, 0.0  ;;  %v777_v17 = vmul.f32 %v1433_v13, %v1886_v37  ;;  %v1435_v25 = vpop.eup %1434  ;;  %v576_v18 = vrot.slane %v1862_v19, 4 }
  0xe9   :  { %v1979_v5 = vpop.f32.mrf.mxu2  ;;  %v840_v27 = vsel %vm185_vm0, %v774_v8, 0.0  ;;  %v1437_v29 = vpop.eup %1436  ;;  %v784_v33 = vmul.f32 %v1435_v25, %v1886_v37  ;;  %v616_v13 = vperm.slane %v585_v12, 0 }
  0xea   :  { %v1985_v11 = vadd.f32 %v663_v4, %v1900_v53  ;;  %v687_v53 = vadd.f32 %v623_v14, %v1908_v61  ;;  %v849_v28 = vsel %vm185_vm0, %v777_v17, 0.0  ;;  %v776_v31 = vmul.f32 %v1437_v29, %v1886_v37  ;;  %v2003_v43 = vpop.f32.mrf.mxu1  ;;  %v1439_v58 = vpop.eup %1438 }
  0xeb   :  { %v870_v48 = vsel %vm185_vm0, %v784_v33, 0.0  ;;  %v783_v59 = vmul.f32 %v1439_v58, %v1886_v37  ;;  %v606_v9 = vperm.slane %v576_v18, 0  ;;  %v679_v29 = vadd.f32 %v615_v21, %v1961_v39 }
  0xec   :  { %v719_v23 = vadd.f32 %v687_v53, %v1903_v57  ;;  %v846_v47 = vsel %vm185_vm0, %v776_v31, 0.0  ;;  %v680_v53 = vadd.f32 %v616_v13, %v1979_v5 }
  0xed   :  { %v867_v3 = vsel %vm185_vm0, %v783_v59, 0.0 }
  0xee   :  { %838 = vadd.xlane.f32.xlu0 %v837_v34  ;;  %844 = vadd.xlane.f32.xlu2 %v843_v42  ;;  %1440 = vtanh.f32 %v719_v23  ;;  %v712_v17 = vadd.f32 %v680_v53, %v1945_v62 }
  0xef   :  { %1442 = vtanh.f32 %v1913_v1 }
  0xf0   :  { %1444 = vtanh.f32 %v1966_v45 }
  0xf1   :  { %v539_v16 = vpop.f32.mrf.mxu2  ;;  %1446 = vtanh.f32 %v1923_v22 }
  0xf2   :  { %v681_v52 = vadd.f32 %v617_v50, %v539_v16  ;;  %v512_v45 = vpop.f32.mrf.mxu1 }
  0xf3   :  { %v670_v36 = vadd.f32 %v606_v9, %v512_v45 }
  0xf4   :  { %v1441_v49 = vpop.eup %1440  ;;  %v713_v0 = vadd.f32 %v681_v52, %v1945_v62  ;;  %v577_v52 = vrot.slane %v1862_v19, 5 }
  0xf5   :  { %v786_v60 = vmul.f32 %v1441_v49, %v1886_v37  ;;  %v1443_v1 = vpop.eup %1442  ;;  %v702_v34 = vadd.f32 %v670_v36, %v1873_v26  ;;  %v2075_v36 = vpop.permute.xlu1 %888 }
  0xf6   :  { %841 = vadd.xlane.f32.xlu0 %v840_v27  ;;  %850 = vadd.xlane.f32.xlu2 %v849_v28  ;;  %v1445_v6 = vpop.eup %1444  ;;  %1448 = vtanh.f32 %v713_v0  ;;  %v607_v18 = vperm.slane %v577_v52, 0 }
  0xf7   :  { %v876_v4 = vsel %vm185_vm0, %v786_v60, 0.0  ;;  %v761_v38 = vmul.f32 %v1445_v6, %v1886_v37  ;;  %v1447_v42 = vpop.eup %1446  ;;  %1450 = vtanh.f32 %v700_v20  ;;  %v2079_v20 = vpop.permute.xlu2 %957 }
  0xf8   :  { %1452 = vtanh.f32 %v702_v34  ;;  %v787_v16 = vmul.f32 %v1447_v42, %v1886_v37 }
  0xf9   :  { %v542_v61 = vpop.f32.mrf.mxu2  ;;  %v801_v32 = vsel %vm185_vm0, %v761_v38, 0.0  ;;  %1454 = vtanh.f32 %v712_v17  ;;  %v1027_v38 = vlaneseq }
  0xfa   :  { %v682_v41 = vadd.f32 %v618_v24, %v542_v61  ;;  %v879_v25 = vsel %vm185_vm0, %v787_v16, 0.0  ;;  %v711_v24 = vadd.f32 %v679_v29, %v1945_v62  ;;  %v575_v61 = vrot.slane %v1862_v19, 3 }
  0xfc   :  { %v2006_v44 = vadd.f32 %v682_v41, %v1903_v57  ;;  %v1449_v22 = vpop.eup %1448  ;;  %v605_v39 = vperm.slane %v575_v61, 0 }
  0xfd   :  { %v780_v8 = vmul.f32 %v1449_v22, %v1886_v37  ;;  %v1451_v23 = vpop.eup %1450 }
  0xfe   :  { %847 = vadd.xlane.f32.xlu0 %v846_v47  ;;  %871 = vadd.xlane.f32.xlu2 %v870_v48  ;;  %v1453_v28 = vpop.eup %1452  ;;  %v767_v30 = vmul.f32 %v1451_v23, %v1886_v37  ;;  %v669_v46 = vadd.f32 %v605_v39, %v2003_v43  ;;  %v154_v23 = vld [vmem:[%s2291_s4 + $0x18] sm:$0xff] }
  0xff   :  { %v858_v27 = vsel %vm185_vm0, %v780_v8, 0.0  ;;  %v769_v5 = vmul.f32 %v1453_v28, %v1886_v37  ;;  %v1455_v31 = vpop.eup %1454 }
 0x100   :  { %v819_v33 = vsel %vm185_vm0, %v767_v30, 0.0  ;;  %v779_v58 = vmul.f32 %v1455_v31, %v1886_v37  ;;  %v701_v48 = vadd.f32 %v669_v46, %v1873_v26 }
 0x101   :  { %v544_v55 = vpop.f32.mrf.mxu2  ;;  %962 = vperm.xlu1 %1388, %v152_v51   ;;  %v825_v35 = vsel %vm185_vm0, %v769_v5, 0.0 }
 0x102   :  { %v683_v63 = vadd.f32 %v619_v54, %v544_v55  ;;  %v855_v49 = vsel %vm185_vm0, %v779_v58, 0.0  ;;  %v514_v55 = vpop.f32.mrf.mxu1 }
 0x103   :  { %v671_v0 = vadd.f32 %v607_v18, %v514_v55 }
 0x104   :  { %v715_v2 = vadd.f32 %v683_v63, %v1903_v57  ;;  %v785_v57 = vmul.f32 %v1443_v1, %v1886_v37 }
 0x105   :  { %v703_v1 = vadd.f32 %v671_v0, %v1873_v26 }
 0x106   :  { %868 = vadd.xlane.f32.xlu0 %v867_v3  ;;  %877 = vadd.xlane.f32.xlu2 %v876_v4  ;;  %v873_v14 = vsel %vm185_vm0, %v785_v57, 0.0  ;;  %1456 = vtanh.f32 %v715_v2 }
 0x107   :  { %1458 = vtanh.f32 %v711_v24 }
 0x108   :  { %1460 = vtanh.f32 %v1985_v11 }
 0x109   :  { %1462 = vtanh.f32 %v1940_v56 }
 0x10a   :  { %1464 = vtanh.f32 %v701_v48 }
 0x10b   :  { %1466 = vtanh.f32 %v2006_v44  ;;  %v153_v44 = vld [vmem:[%s2291_s4 + $0x10] sm:$0xff] }
 0x10c   :  { %v1457_v41 = vpop.eup %1456  ;;  %1468 = vtanh.f32 %v703_v1 }
 0x10d   :  { %v782_v62 = vmul.f32 %v1457_v41, %v1886_v37  ;;  %v1459_v47 = vpop.eup %1458 }
 0x10e   :  { %874 = vadd.xlane.f32.xlu0 %v873_v14  ;;  %802 = vadd.xlane.f32.xlu2 %v801_v32  ;;  %v1461_v51 = vpop.eup %1460  ;;  %v778_v11 = vmul.f32 %v1459_v47, %v1886_v37  ;;  %v2082_v14 = vand.u32 127, %v1027_v38 }
 0x10f   :  { %v864_v50 = vsel %vm185_vm0, %v782_v62, 0.0  ;;  %v762_v43 = vmul.f32 %v1461_v51, %v1886_v37  ;;  %v1463_v40 = vpop.eup %1462 }
 0x110   :  { %v852_v54 = vsel %vm185_vm0, %v778_v11, 0.0  ;;  %v1465_v60 = vpop.eup %1464  ;;  %v788_v63 = vmul.f32 %v1463_v40, %v1886_v37 }
 0x111   :  { %v804_v59 = vsel %vm185_vm0, %v762_v43, 0.0  ;;  %v768_v2 = vmul.f32 %v1465_v60, %v1886_v37  ;;  %v1467_v45 = vpop.eup %1466 }
 0x112   :  { %v882_v19 = vsel %vm185_vm0, %v788_v63, 0.0  ;;  %v781_v4 = vmul.f32 %v1467_v45, %v1886_v37  ;;  %v1469_v9 = vpop.eup %1468 }
 0x113   :  { %v822_v7 = vsel %vm185_vm0, %v768_v2, 0.0  ;;  %v770_v10 = vmul.f32 %v1469_v9, %v1886_v37 }
 0x114   :  { %v861_v6 = vsel %vm185_vm0, %v781_v4, 0.0 }
 0x115   :  { %v828_v12 = vsel %vm185_vm0, %v770_v10, 0.0 }
 0x116   :  { %880 = vadd.xlane.f32.xlu0 %v879_v25  ;;  %859 = vadd.xlane.f32.xlu2 %v858_v27 }
 0x11e   :  { %820 = vadd.xlane.f32.xlu0 %v819_v33  ;;  %826 = vadd.xlane.f32.xlu2 %v825_v35 }
 0x126   :  { %856 = vadd.xlane.f32.xlu0 %v855_v49  ;;  %865 = vadd.xlane.f32.xlu2 %v864_v50 }
 0x12b   :  { %853 = vadd.xlane.f32.xlu1 %v852_v54 }
 0x12d   :  { %v2059_v56 = vpop.xlane.xlu0 %832 }
 0x12e   :  { %805 = vadd.xlane.f32.xlu0 %v804_v59 }
 0x133   :  { %883 = vadd.xlane.f32.xlu1 %v882_v19 }
 0x135   :  { %v2067_v3 = vpop.xlane.xlu0 %835 }
 0x136   :  { %823 = vadd.xlane.f32.xlu0 %v822_v7 }
 0x13e   :  { %967 = vperm.xlu2 %1389, %v153_v44   ;;  %862 = vadd.xlane.f32.xlu0 %v861_v6 }
 0x141   :  { %v791_v26 = vpop.xlane.xlu0 %790 }
 0x142   :  { %v891_v57 = vadd.f32 %v2075_v36, %v791_v26 }
 0x143   :  { %v809_v53 = vpop.xlane.xlu2 %808 }
 0x144   :  { %v923_v42 = vmul.f32 0.17677669, %v891_v57  ;;  %v897_v57 = vadd.f32 %v2075_v36, %v809_v53 }
 0x146   :  { %829 = vadd.xlane.f32.xlu0 %v828_v12  ;;  %v1029_v37 = vperm.slane %v923_v42, %v2082_v14  ;;  %v1404_v12 = vld [vmem:[#allocation6 + $0x2] ss:$0 sm:$0xff] }
 0x149   :  { %v794_v34 = vpop.xlane.xlu0 %793 }
 0x14a   :  { %v892_v13 = vadd.f32 %v2075_v36, %v794_v34 }
 0x14c   :  { %v924_v32 = vmul.f32 0.17677669, %v892_v13 }
 0x14e   :  { %v1030_v22 = vperm.slane %v924_v32, %v2082_v14 }
 0x150   :  { %v1062_v15 = vsel %vm1061_vm1, %v1030_v22, %v1029_v37  ;;  %v1402_v22 = vld [vmem:[#allocation6] ss:$0 sm:$0xff] }
 0x151   :  { %v812_v16 = vpop.xlane.xlu0 %811  ;;  %v797_v8 = vpop.xlane.xlu1 %796 }
 0x152   :  { %v893_v17 = vadd.f32 %v2075_v36, %v797_v8  ;;  %v898_v13 = vadd.f32 %v2075_v36, %v812_v16 }
 0x154   :  { %v925_v21 = vmul.f32 0.17677669, %v893_v17 }
 0x156   :  { %v1031_v29 = vperm.slane %v925_v21, %v2082_v14 }
 0x158   :  { %v1064_v24 = vsel %vm1063_vm2, %v1031_v29, %v1062_v15  ;;  %v929_v29 = vmul.f32 0.17677669, %v897_v57 }
 0x159   :  { %v2091_v25 = vpop.xlane.xlu0 %814  ;;  %v800_v27 = vpop.xlane.xlu2 %799 }
 0x15a   :  { %v894_v28 = vadd.f32 %v2075_v36, %v800_v27  ;;  %972 = vperm.xlu0 %1390, %v154_v23  }
 0x15b   :  { %v2110_v51 = vpop.xlane.xlu1 %817 }
 0x15c   :  { %v926_v30 = vmul.f32 0.17677669, %v894_v28 }
 0x15e   :  { %v1032_v5 = vperm.slane %v926_v30, %v2082_v14 }
 0x160   :  { %v2098_v61 = vsel %vm1065_vm3, %v1032_v5, %v1064_v24  ;;  %v930_v5 = vmul.f32 0.17677669, %v898_v13 }
 0x161   :  { %v839_v31 = vpop.xlane.xlu0 %838  ;;  %v845_v33 = vpop.xlane.xlu2 %844 }
 0x162   :  { %v907_v54 = vadd.f32 %v2075_v36, %v839_v31  ;;  %v909_v59 = vadd.f32 %v2075_v36, %v845_v33  ;;  %v2145_v33 = vmul.f32 %v1402_v22, %v2079_v20 }
 0x164   :  { %v939_v60 = vmul.f32 0.17677669, %v907_v54  ;;  %v941_v1 = vmul.f32 0.17677669, %v909_v59  ;;  %vm991_vm10 = vcmp.eq.f32.partialorder %v2145_v33, 0.0 }
 0x166   :  { %v1045_v7 = vperm.slane %v939_v60, %v2082_v14  ;;  %v1047_v26 = vperm.slane %v941_v1, %v2082_v14 }
 0x169   :  { %v842_v35 = vpop.xlane.xlu0 %841  ;;  %v851_v41 = vpop.xlane.xlu2 %850 }
 0x16a   :  { %v908_v11 = vadd.f32 %v2075_v36, %v842_v35  ;;  %v911_v45 = vadd.f32 %v2075_v36, %v851_v41 }
 0x16c   :  { %v940_v40 = vmul.f32 0.17677669, %v908_v11  ;;  %v943_v38 = vmul.f32 0.17677669, %v911_v45  ;;  %v1035_v11 = vperm.slane %v929_v29, %v2082_v14  ;;  %v899_v45 = vadd.f32 %v2075_v36, %v2091_v25 }
 0x16e   :  { %v1046_v63 = vperm.slane %v940_v40, %v2082_v14  ;;  %v1049_v16 = vperm.slane %v943_v38, %v2082_v14  ;;  %v1036_v40 = vperm.slane %v930_v5, %v2082_v14 }
 0x170   :  { %v1082_v44 = vsel %vm1061_vm1, %v1046_v63, %v1045_v7 }
 0x171   :  { %v848_v39 = vpop.xlane.xlu0 %847  ;;  %v2100_v46 = vpop.xlane.xlu2 %871  ;;  %v1083_v32 = vsel %vm1063_vm2, %v1047_v26, %v1082_v44 }
 0x172   :  { %v910_v55 = vadd.f32 %v2075_v36, %v848_v39  ;;  %v918_v26 = vadd.f32 %v2075_v36, %v2100_v46 }
 0x173   :  { %v2120_v18 = vpop.permute.xlu1 %962 }
 0x174   :  { %v942_v0 = vmul.f32 0.17677669, %v910_v55 }
 0x176   :  { %v1048_v6 = vperm.slane %v942_v0, %v2082_v14 }
 0x178   :  { %v1084_v15 = vsel %vm1065_vm3, %v1048_v6, %v1083_v32 }
 0x179   :  { %v2102_v58 = vpop.xlane.xlu0 %868  ;;  %v2104_v62 = vpop.xlane.xlu2 %877  ;;  %v1085_v41 = vsel %vm1067_vm4, %v1049_v16, %v1084_v15 }
 0x17a   :  { %v917_v6 = vadd.f32 %v2075_v36, %v2102_v58 }
 0x181   :  { %v2106_v47 = vpop.xlane.xlu0 %874  ;;  %v803_v48 = vpop.xlane.xlu2 %802 }
 0x182   :  { %v895_v4 = vadd.f32 %v2075_v36, %v803_v48  ;;  %v919_v25 = vadd.f32 %v2075_v36, %v2106_v47 }
 0x184   :  { %v927_v34 = vmul.f32 0.17677669, %v895_v4  ;;  %v900_v4 = vadd.f32 %v2075_v36, %v2110_v51 }
 0x186   :  { %v1033_v30 = vperm.slane %v927_v34, %v2082_v14  ;;  %v932_v51 = vmul.f32 0.17677669, %v900_v4  ;;  %v949_v34 = vmul.f32 0.17677669, %v917_v6 }
 0x188   :  { %v1068_v54 = vsel %vm1067_vm4, %v1033_v30, %v2098_v61  ;;  %v1038_v47 = vperm.slane %v932_v51, %v2082_v14 }
 0x189   :  { %v2108_v49 = vpop.xlane.xlu0 %880  ;;  %v860_v50 = vpop.xlane.xlu2 %859 }
 0x18a   :  { %v914_v10 = vadd.f32 %v2075_v36, %v860_v50  ;;  %v921_v4 = vadd.f32 %v2075_v36, %v2108_v49 }
 0x18c   :  { %v946_v23 = vmul.f32 0.17677669, %v914_v10 }
 0x18e   :  { %v1052_v39 = vperm.slane %v946_v23, %v2082_v14 }
 0x191   :  { %v2113_v43 = vpop.xlane.xlu0 %820  ;;  %v2115_v52 = vpop.xlane.xlu2 %826 }
 0x192   :  { %v903_v22 = vadd.f32 %v2075_v36, %v2115_v52 }
 0x194   :  { %v935_v30 = vmul.f32 0.17677669, %v903_v22 }
 0x199   :  { %v857_v2 = vpop.xlane.xlu0 %856  ;;  %v2123_v19 = vpop.xlane.xlu2 %865 }
 0x19a   :  { %v913_v9 = vadd.f32 %v2075_v36, %v857_v2  ;;  %v916_v44 = vadd.f32 %v2075_v36, %v2123_v19  ;;  %v920_v19 = vadd.f32 %v2075_v36, %v2104_v62 }
 0x19c   :  { %v945_v8 = vmul.f32 0.17677669, %v913_v9  ;;  %v901_v9 = vadd.f32 %v2075_v36, %v2113_v43  ;;  %v948_v38 = vmul.f32 0.17677669, %v916_v44  ;;  %v950_v43 = vmul.f32 0.17677669, %v918_v26 }
 0x19d   :  { %v952_v15 = vmul.f32 0.17677669, %v920_v19 }
 0x19e   :  { %v854_v42 = vpop.xlane.xlu1 %853  ;;  %v1051_v35 = vperm.slane %v945_v8, %v2082_v14  ;;  %v1054_v8 = vperm.slane %v948_v38, %v2082_v14 }
 0x19f   :  { %v912_v37 = vadd.f32 %v2075_v36, %v854_v42  ;;  %v933_v42 = vmul.f32 0.17677669, %v901_v9 }
 0x1a1   :  { %v968_v17 = vpop.permute.xlu2 %967  ;;  %v806_v21 = vpop.xlane.xlu0 %805  ;;  %v944_v27 = vmul.f32 0.17677669, %v912_v37  ;;  %v951_v37 = vmul.f32 0.17677669, %v919_v25  ;;  %v1039_v23 = vperm.slane %v933_v42, %v2082_v14  ;;  %v1405_v25 = vld [vmem:[#allocation6 + $0x3] ss:$0 sm:$0xff] }
 0x1a2   :  { %v2138_v28 = vmul.f32 %v1404_v12, %v968_v17  ;;  %v896_v53 = vadd.f32 %v2075_v36, %v806_v21  ;;  %v931_v12 = vmul.f32 0.17677669, %v899_v45  ;;  %v905_v17 = vadd.f32 %v2075_v36, %v2059_v56 }
 0x1a3   :  { %v1050_v24 = vperm.slane %v944_v27, %v2082_v14  ;;  %v1055_v21 = vperm.slane %v949_v34, %v2082_v14  ;;  %v906_v27 = vadd.f32 %v2075_v36, %v2067_v3  ;;  %v1057_v16 = vperm.slane %v951_v37, %v2082_v14 }
 0x1a4   :  { %v928_v31 = vmul.f32 0.17677669, %v896_v53  ;;  %vm993_vm8 = vcmp.eq.f32.partialorder %v2138_v28, 0.0  ;;  %v1037_v46 = vperm.slane %v931_v12, %v2082_v14  ;;  %v1056_v53 = vperm.slane %v950_v43, %v2082_v14 }
 0x1a5   :  { %v1086_v50 = vsel %vm1069_vm5, %v1050_v24, %v1085_v41 }
 0x1a6   :  { %v1034_v48 = vperm.slane %v928_v31, %v2082_v14  ;;  %v1087_v20 = vsel %vm1071_vm6, %v1051_v35, %v1086_v50  ;;  %v1075_v56 = vsel %vm1061_vm1, %v1038_v47, %v1037_v46  ;;  %v1403_v31 = vld [vmem:[#allocation6 + $0x1] ss:$0 sm:$0xff]  ;;  %v1058_v35 = vperm.slane %v952_v15, %v2082_v14  ;;  %v884_v44 = vpop.xlane.xlu1 %883 }
 0x1a7   :  { %v1088_v55 = vsel %vm1073_vm7, %v1052_v39, %v1087_v20  ;;  %v937_v39 = vmul.f32 0.17677669, %v905_v17  ;;  %v922_v26 = vadd.f32 %v2075_v36, %v884_v44  ;;  %v1489_v44 = vld [vmem:[%s2287_s0 + $0x10] sm:$0xff] }
 0x1a8   :  { %v1070_v59 = vsel %vm1069_vm5, %v1034_v48, %v1068_v54  ;;  %v2160_v60 = vsel %vm993_vm8, -1e+09, %v1088_v55  ;;  %v1076_v48 = vsel %vm1063_vm2, %v1039_v23, %v1075_v56  ;;  %v1041_v55 = vperm.slane %v935_v30, %v2082_v14 }
 0x1a9   :  { %v824_v63 = vpop.xlane.xlu0 %823  ;;  %v1072_v0 = vsel %vm1071_vm6, %v1035_v11, %v1070_v59  ;;  %v1111_v2 = vsel %vm1104_vm9, %v2160_v60, -inf  ;;  %v938_v11 = vmul.f32 0.17677669, %v906_v27  ;;  %v2216_v59 = vmul.f32 %v1403_v31, %v2120_v18 }
 0x1aa   :  { %v1074_v61 = vsel %vm1073_vm7, %v1036_v40, %v1072_v0  ;;  %1112 = vmax.xlane.f32.xlu2 %v1111_v2  ;;  %v902_v10 = vadd.f32 %v2075_v36, %v824_v63  ;;  %v1043_v0 = vperm.slane %v937_v39, %v2082_v14  ;;  %v954_v12 = vmul.f32 0.17677669, %v922_v26  ;;  %v1488_v39 = vld [vmem:[%s2287_s0 + $0x8] sm:$0xff] }
 0x1ab   :  { %v2167_v1 = vsel %vm991_vm10, -1e+09, %v1074_v61  ;;  %v1044_v61 = vperm.slane %v938_v11, %v2082_v14  ;;  %vm992_vm11 = vcmp.eq.f32.partialorder %v2216_v59, 0.0 }
 0x1ac   :  { %v1105_v7 = vsel %vm1104_vm9, %v2167_v1, -inf  ;;  %v934_v13 = vmul.f32 0.17677669, %v902_v10  ;;  %v953_v10 = vmul.f32 0.17677669, %v921_v4  ;;  %v1060_v49 = vperm.slane %v954_v12, %v2082_v14 }
 0x1ad   :  { %1106 = vmax.xlane.f32.xlu1 %v1105_v7 }
 0x1ae   :  { %v1040_v52 = vperm.slane %v934_v13, %v2082_v14 }
 0x1b0   :  { %v1077_v54 = vsel %vm1065_vm3, %v1040_v52, %v1076_v48  ;;  %v1210_v48 = vpack.c.bf16 %v1488_v39, %v1488_v39 }
 0x1b1   :  { %v863_v57 = vpop.xlane.xlu0 %862  ;;  %v1078_v2 = vsel %vm1067_vm4, %v1041_v55, %v1077_v54 }
 0x1b2   :  { %v915_v58 = vadd.f32 %v2075_v36, %v863_v57  ;;  %v1059_v57 = vperm.slane %v953_v10, %v2082_v14 }
 0x1b4   :  { %v947_v32 = vmul.f32 0.17677669, %v915_v58 }
 0x1b6   :  { %v1053_v62 = vperm.slane %v947_v32, %v2082_v14 }
 0x1b8   :  { %v1089_v29 = vsel %vm1061_vm1, %v1054_v8, %v1053_v62 }
 0x1b9   :  { %v1090_v5 = vsel %vm1063_vm2, %v1055_v21, %v1089_v29  ;;  %v830_v24 = vpop.xlane.xlu0 %829 }
 0x1ba   :  { %v904_v41 = vadd.f32 %v2075_v36, %v830_v24  ;;  %v1091_v3 = vsel %vm1065_vm3, %v1056_v53, %v1090_v5  ;;  %v1487_v5 = vld [vmem:[%s2287_s0 + $0x18] sm:$0xff] }
 0x1bb   :  { %v1092_v50 = vsel %vm1067_vm4, %v1057_v16, %v1091_v3  ;;  %v1212_v24 = vpack.c.bf16 %v1487_v5, %v1487_v5 }
 0x1bc   :  { %v936_v20 = vmul.f32 0.17677669, %v904_v41  ;;  %v1093_v40 = vsel %vm1069_vm5, %v1058_v35, %v1092_v50 }
 0x1bd   :  { %v1094_v19 = vsel %vm1071_vm6, %v1059_v57, %v1093_v40  ;;  %v1275_v56 = vsel %vm1216_vm13, %v1212_v24, 0 }
 0x1be   :  { %v1042_v63 = vperm.slane %v936_v20, %v2082_v14  ;;  %v1095_v58 = vsel %vm1073_vm7, %v1060_v49, %v1094_v19  ;;  %1284 = vmatpush.bf16.msra.mxu0 %v1275_v56  ;;  %v1237_v20 = vsel %vm1216_vm13, %v1210_v48, 0 }
 0x1c0   :  { %v1079_v7 = vsel %vm1069_vm5, %v1042_v63, %v1078_v2 }
 0x1c1   :  { %v1080_v45 = vsel %vm1071_vm6, %v1043_v0, %v1079_v7 }
 0x1c2   :  { %v1081_v18 = vsel %vm1073_vm7, %v1044_v61, %v1080_v45 }
 0x1c3   :  { %v1101_v6 = vsel %vm992_vm11, -1e+09, %v1081_v18  ;;  %v1211_v18 = vpack.c.bf16 %v1489_v44, %v1489_v44 }
 0x1c4   :  { %v1108_v9 = vsel %vm1104_vm9, %v1101_v6, -inf }
 0x1c5   :  { %1109 = vmax.xlane.f32.xlu1 %v1108_v9 }
 0x1cc   :  { %v973_v51 = vpop.permute.xlu0 %972 }
 0x1cd   :  { %v2233_v38 = vmul.f32 %v1405_v25, %v973_v51 }
 0x1cf   :  { %vm994_vm12 = vcmp.eq.f32.partialorder %v2233_v38, 0.0 }
 0x1d0   :  { %v1103_v34 = vsel %vm994_vm12, -1e+09, %v1095_v58 }
 0x1d1   :  { %v1114_v36 = vsel %vm1104_vm9, %v1103_v34, -inf }
 0x1d2   :  { %1115 = vmax.xlane.f32.xlu1 %v1114_v36 }
 0x21d   :  { %v1113_v42 = vpop.xlane.xlu2 %1112 }
 0x21e   :  { %v1119_v43 = vsub.f32 %v2160_v60, %v1113_v42  ;;  %v1486_v60 = vld [vmem:[%s2287_s0] sm:$0xff]  ;;  %s1652_s0 = smov [#allocation12]  }
 0x21f   :  { %v1209_v8 = vpack.c.bf16 %v1486_v60, %v1486_v60  ;;  %s1298_s29 = sshll.u32 %s1652_s0, 4  ;;  %s1299_s29 = int_to_ptr.vmem [resolvable:$true] %s1298_s29 }
 0x220   :  { %v1107_v13 = vpop.xlane.xlu1 %1106  ;;  %v1125_v32 = vmul.f32 1.442695, %v1119_v43 }
 0x221   :  { %v1117_v46 = vsub.f32 %v2167_v1, %v1107_v13  ;;  %v1218_v1 = vsel %vm1216_vm13, %v1209_v8, 0 }
 0x222   :  { %1470 = vpow2.f32 %v1125_v32  ;;  %1227 = vmatpush.bf16.msrb.mxu3 %v1218_v1 }
 0x223   :  { %v1121_v37 = vmul.f32 1.442695, %v1117_v46 }
 0x225   :  { %1472 = vpow2.f32 %v1121_v37 }
 0x226   :  { %1246 = vmatpush.bf16.msra.mxu3 %v1237_v20 }
 0x228   :  { %v2240_v14 = vpop.eup %1470 }
 0x229   :  { %v1135_v22 = vsel %vm1104_vm9, %v2240_v14, 0.0 }
 0x22a   :  { %1136 = vadd.xlane.f32.xlu0 %v1135_v22 }
 0x22b   :  { %v1473_v47 = vpop.eup %1472 }
 0x22c   :  { %v1129_v15 = vsel %vm1104_vm9, %v1473_v47, 0.0 }
 0x22d   :  { %1130 = vadd.xlane.f32.xlu1 %v1129_v15 }
 0x238   :  { %v1110_v62 = vpop.xlane.xlu1 %1109 }
 0x239   :  { %v1118_v17 = vsub.f32 %v1101_v6, %v1110_v62  ;;  %v1256_v6 = vsel %vm1216_vm13, %v1211_v18, 0 }
 0x23b   :  { %v1123_v21 = vmul.f32 1.442695, %v1118_v17 }
 0x23d   :  { %1474 = vpow2.f32 %v1123_v21 }
 0x243   :  { %v2249_v23 = vpop.eup %1474 }
 0x244   :  { %v1132_v27 = vsel %vm1104_vm9, %v2249_v23, 0.0 }
 0x245   :  { %1133 = vadd.xlane.f32.xlu1 %v1132_v27  ;;  %v1116_v53 = vpop.xlane.xlu1 %1115 }
 0x246   :  { %v1120_v52 = vsub.f32 %v1103_v34, %v1116_v53 }
 0x248   :  { %v1127_v29 = vmul.f32 1.442695, %v1120_v52 }
 0x24a   :  { %1476 = vpow2.f32 %v1127_v29 }
 0x250   :  { %v2253_v16 = vpop.eup %1476 }
 0x251   :  { %v1138_v30 = vsel %vm1104_vm9, %v2253_v16, 0.0 }
 0x252   :  { %1139 = vadd.xlane.f32.xlu1 %v1138_v30 }
 0x29d   :  { %v1137_v61 = vpop.xlane.xlu0 %1136 }
 0x29e   :  { %v1182_v22 = vand.u32 2147483648, %v1137_v61  ;;  %vm1176_vm8 = vweird.f32 %v1137_v61  ;;  %v1180_v15 = vand.u32 2147483647, %v1137_v61 }
 0x2a0   :  { %v1131_v31 = vpop.xlane.xlu1 %1130  ;;  %v1183_v17 = vor.u32 1.1754944e-38, %v1182_v22  ;;  %vm1181_vm12 = vcmp.eq.f32.partialorder %v1180_v15, 8.507059e+37 }
 0x2a1   :  { %1478 = vrcp.f32 %v1131_v31  ;;  %v1152_v50 = vand.u32 2147483648, %v1131_v31  ;;  %v1150_v54 = vand.u32 2147483647, %v1131_v31  ;;  %vm1146_vm15 = vweird.f32 %v1131_v31 }
 0x2a2   :  { %1480 = vrcp.f32 %v1137_v61 }
 0x2a3   :  { %v1153_v55 = vor.u32 1.1754944e-38, %v1152_v50  ;;  %vm1151_vm2 = vcmp.eq.f32.partialorder %v1150_v54, 8.507059e+37 }
 0x2a7   :  { %v1479_v35 = vpop.eup %1478 }
 0x2a8   :  { %v1142_v41 = vmul.f32 %v1479_v35, %v1131_v31  ;;  %vm1147_vm14 = vweird.f32 %v1479_v35  ;;  %v1481_v9 = vpop.eup %1480 }
 0x2a9   :  { %vm1148_vm1 = vmor %vm1146_vm15, %vm1147_vm14  ;;  %v1172_v10 = vmul.f32 %v1481_v9, %v1137_v61  ;;  %vm1177_vm7 = vweird.f32 %v1481_v9 }
 0x2aa   :  { %v1143_v3 = vsub.f32 1.0, %v1142_v41  ;;  %vm1178_vm10 = vmor %vm1176_vm8, %vm1177_vm7 }
 0x2ab   :  { %v1173_v57 = vsub.f32 1.0, %v1172_v10 }
 0x2ac   :  { %v1144_v11 = vmul.f32 %v1479_v35, %v1143_v3 }
 0x2ad   :  { %v1174_v36 = vmul.f32 %v1481_v9, %v1173_v57 }
 0x2ae   :  { %v1145_v40 = vadd.f32 %v1479_v35, %v1144_v11 }
 0x2af   :  { %v1175_v46 = vadd.f32 %v1481_v9, %v1174_v36 }
 0x2b0   :  { %v1149_v63 = vsel %vm1148_vm1, %v1479_v35, %v1145_v40 }
 0x2b1   :  { %v1154_v0 = vsel %vm1151_vm2, %v1153_v55, %v1149_v63  ;;  %v1179_v1 = vsel %vm1178_vm10, %v1481_v9, %v1175_v46 }
 0x2b2   :  { %v1155_v2 = vmul.f32 %v1473_v47, %v1154_v0  ;;  %v1184_v27 = vsel %vm1181_vm12, %v1183_v17, %v1179_v1 }
 0x2b3   :  { %v1185_v29 = vmul.f32 %v2240_v14, %v1184_v27 }
 0x2b4   :  { %v1201_v7 = vmul.f32 %v1155_v2, %v2145_v33 }
 0x2b5   :  { %v1203_v56 = vmul.f32 %v1185_v29, %v2138_v28 }
 0x2b6   :  { %v1205_v45 = vpack.c.bf16 %v1201_v7, %v1201_v7 }
 0x2b7   :  { %v1207_v35 = vpack.c.bf16 %v1203_v56, %v1203_v56 }
 0x2b8   :  { %1359 = vmatmul.msk.bf16.vlgmr.msrb.gmra.mxu3 %vm1104_vm9, %v1205_v45  ;;  %v1134_v4 = vpop.xlane.xlu1 %1133 }
 0x2b9   :  { %1482 = vrcp.f32 %v1134_v4  ;;  %1265 = vmatpush.bf16.msrb.mxu3 %v1256_v6  ;;  %v1167_v33 = vand.u32 2147483648, %v1134_v4  ;;  %v1165_v19 = vand.u32 2147483647, %v1134_v4  ;;  %vm1161_vm4 = vweird.f32 %v1134_v4 }
 0x2bb   :  { %v1168_v34 = vor.u32 1.1754944e-38, %v1167_v33  ;;  %vm1166_vm6 = vcmp.eq.f32.partialorder %v1165_v19, 8.507059e+37 }
 0x2bf   :  { %v1483_v26 = vpop.eup %1482 }
 0x2c0   :  { %v1157_v12 = vmul.f32 %v1483_v26, %v1134_v4  ;;  %vm1162_vm3 = vweird.f32 %v1483_v26 }
 0x2c1   :  { %vm1163_vm5 = vmor %vm1161_vm4, %vm1162_vm3 }
 0x2c2   :  { %v1158_v25 = vsub.f32 1.0, %v1157_v12 }
 0x2c4   :  { %v1159_v51 = vmul.f32 %v1483_v26, %v1158_v25 }
 0x2c5   :  { %v1140_v49 = vpop.xlane.xlu1 %1139 }
 0x2c6   :  { %v1160_v58 = vadd.f32 %v1483_v26, %v1159_v51  ;;  %1484 = vrcp.f32 %v1140_v49  ;;  %v1197_v62 = vand.u32 2147483648, %v1140_v49  ;;  %vm1191_vm13 = vweird.f32 %v1140_v49 }
 0x2c8   :  { %v1164_v42 = vsel %vm1163_vm5, %v1483_v26, %v1160_v58 }
 0x2c9   :  { %v1169_v43 = vsel %vm1166_vm6, %v1168_v34, %v1164_v42 }
 0x2ca   :  { %v1170_v13 = vmul.f32 %v2249_v23, %v1169_v43  ;;  %v1195_v23 = vand.u32 2147483647, %v1140_v49 }
 0x2cc   :  { %v1485_v32 = vpop.eup %1484  ;;  %v1202_v37 = vmul.f32 %v1170_v13, %v2216_v59  ;;  %v1198_v59 = vor.u32 1.1754944e-38, %v1197_v62  ;;  %vm1196_vm15 = vcmp.eq.f32.partialorder %v1195_v23, 8.507059e+37 }
 0x2cd   :  { %v1187_v47 = vmul.f32 %v1485_v32, %v1140_v49  ;;  %vm1192_vm11 = vweird.f32 %v1485_v32 }
 0x2ce   :  { %v1206_v60 = vpack.c.bf16 %v1202_v37, %v1202_v37  ;;  %vm1193_vm14 = vmor %vm1191_vm13, %vm1192_vm11 }
 0x2cf   :  { %v1188_v8 = vsub.f32 1.0, %v1187_v47 }
 0x2d0   :  { %1360 = vmatmul.msk.bf16.vlgmr.msra.gmra.mxu3 %vm1104_vm9, %v1206_v60 }
 0x2d1   :  { %v1189_v21 = vmul.f32 %v1485_v32, %v1188_v8 }
 0x2d3   :  { %v1190_v53 = vadd.f32 %v1485_v32, %v1189_v21 }
 0x2d5   :  { %v1194_v52 = vsel %vm1193_vm14, %v1485_v32, %v1190_v53 }
 0x2d6   :  { %v1199_v30 = vsel %vm1196_vm15, %v1198_v59, %v1194_v52 }
 0x2d7   :  { %v1200_v5 = vmul.f32 %v2253_v16, %v1199_v30 }
 0x2d9   :  { %v1204_v24 = vmul.f32 %v1200_v5, %v2233_v38 }
 0x2db   :  { %v1208_v31 = vpack.c.bf16 %v1204_v24, %v1204_v24 }
 0x2dd   :  { %1362 = vmatmul.msk.bf16.vlgmr.msra.gmra.mxu0 %vm1104_vm9, %v1208_v31 }
 0x2e0   :  { %1361 = vmatmul.msk.bf16.vlgmr.msrb.gmra.mxu3 %vm1104_vm9, %v1207_v35 }
 0x33b   :  { %v1229_v41 = vpop.f32.mrf.mxu3 }
 0x33c   :  { %1290 = vst.msk [vmem:[#allocation12] sm:$0xff] %vm185_vm0, %v1229_v41 }
 0x343   :  { %v1231_v3 = vpop.f32.mrf.mxu3 }
 0x353   :  { %v1248_v39 = vpop.f32.mrf.mxu3 }
 0x354   :  { %1291 = vst.msk [vmem:[#allocation12 + $0x8] sm:$0xff] %vm185_vm0, %v1248_v39 }
 0x35a   :  { %v1286_v14 = vpop.f32.mrf.mxu0 }
 0x35b   :  { %1293 = vst.msk [vmem:[#allocation12 + $0x18] sm:$0xff] %vm185_vm0, %v1286_v14  ;;  %v1250_v16 = vpop.f32.mrf.mxu3 }
 0x362   :  { %v1288_v28 = vpop.f32.mrf.mxu0 }
 0x363   :  { %v1267_v38 = vpop.f32.mrf.mxu3 }
 0x364   :  { %1292 = vst.msk [vmem:[#allocation12 + $0x10] sm:$0xff] %vm185_vm0, %v1267_v38 }
 0x365   :  { %1306 = dma.vmem_to_hbm [thread:$0]  %s1299_s29, 512, %s1301_s13, [#allocation5], %s1653_s3, %s1653_s3, %s1654_s14  }
 0x36b   :  { %v1269_v48 = vpop.f32.mrf.mxu3 }
 0x36c   :  { %1640 = dma.done.wait [#allocation5], 512  }
 0x36d   :  { %1641 = vsyncadd [#allocation5], 4294966784 }
 0x36e   :  { %1311 = vsyncpa [#allocation4], 1 }
 0x36f   :  { %1312 = vsyncpa [#allocation7], 1 }
 0x370   :  { %1313 = vsyncpa [#allocation10], 1 }
 0x371   :  { %1314 = vsyncpa [#allocation5], 1 }

</bundles_post_ra>
